<compile_context>
chip_gen: v7x
topology: tpu7x:2x2x1
jax: 0.10.0
libtpu: 0.0.40
codegen_flags: <defaults>
</compile_context>

<pallas_src>
import functools

import jax
import jax.numpy as jnp
from jax.experimental import pallas as pl
from jax.experimental.pallas import tpu as pltpu


KH = KW = 3      # conv kernel size (padding=1, stride=1)
LANE = 128       # head output padded to a lane-dense width


def _fused_kernel(x_ref, wc_ref, bc_ref, wh_ref, bh_ref, o_ref, *, H, W, Cin, Cout):
    """One grid step == one image.

    x_ref : [1, H+2, W+2, Cin]   bf16  spatially padded NHWC image
    wc_ref: [KH*KW, Cin, Cout]   bf16  conv weight, (kh, kw)-major / cin rows
    bc_ref: [1, Cout]            f32   conv bias
    wh_ref: [Cout, LANE]         bf16  head weight, classes zero-padded to 128
    bh_ref: [1, LANE]            f32   head bias, zero-padded
    o_ref : [1, 1, LANE]         f32   lane-dense logits
    """
    HW = H * W

    # --- conv as 9 accumulated MXU matmuls (im2col built on-chip) -----------
    # Conv bias is folded into the f32 accumulator init.
    acc = jnp.broadcast_to(bc_ref[...], (HW, Cout)).astype(jnp.float32)
    for di in range(KH):                      # static, unrolled at trace time
        for dj in range(KW):
            patch = x_ref[0, di:di + H, dj:dj + W, :].reshape(HW, Cin)   # bf16
            acc = acc + jnp.dot(patch, wc_ref[di * KW + dj],
                                preferred_element_type=jnp.float32)

    # --- ReLU epilogue (runs once per image) ---------------------------------
    conv = jnp.maximum(acc, 0.0)                               # [HW, Cout] f32

    # --- AdaptiveAvgPool2d(1) + Flatten ---------------------------------------
    pooled = jnp.mean(conv, axis=0, keepdims=True)             # [1, Cout] f32

    # --- head Linear (bf16 MXU dot, f32 accumulate) ---------------------------
    logits = jnp.dot(pooled.astype(jnp.bfloat16), wh_ref[...],
                     preferred_element_type=jnp.float32) + bh_ref[...]  # [1, LANE]
    o_ref[0] = logits


def finetune_model_forward(x_nchw, params):
    """x_nchw: [N, Cin, H, W] float32 (PyTorch layout) -> [N, num_classes] logits."""
    w_conv, b_conv, w_head, b_head = (
        params["w_conv"], params["b_conv"], params["w_head"], params["b_head"])

    N, Cin, H, W = x_nchw.shape
    Cout = w_conv.shape[1]
    num_classes = w_head.shape[1]

    # NCHW -> NHWC, spatial pad=1, bf16 matmul operand (f32 accumulation in-kernel).
    x = jnp.transpose(x_nchw, (0, 2, 3, 1))
    xp = jnp.pad(x, ((0, 0), (1, 1), (1, 1), (0, 0))).astype(jnp.bfloat16)

    # Conv weight rows are (kh, kw, cin)-ordered -> [KH*KW, Cin, Cout].
    wc = w_conv.reshape(KH * KW, Cin, Cout).astype(jnp.bfloat16)
    bc = b_conv.astype(jnp.float32)                                   # [1, Cout]

    # Head: zero-pad classes to 128 so the HBM store is lane-dense / unmasked.
    wh = jnp.zeros((Cout, LANE), jnp.float32).at[:, :num_classes].set(w_head)
    wh = wh.astype(jnp.bfloat16)
    bh = jnp.zeros((1, LANE), jnp.float32).at[:, :num_classes].set(b_head)

    Hp, Wp = H + 2, W + 2
    kernel = functools.partial(_fused_kernel, H=H, W=W, Cin=Cin, Cout=Cout)

    out = pl.pallas_call(
        kernel,
        out_shape=jax.ShapeDtypeStruct((N, 1, LANE), jnp.float32),
        grid=(N,),
        in_specs=[
            pl.BlockSpec((1, Hp, Wp, Cin), lambda n: (n, 0, 0, 0)),    # per-image tile
            pl.BlockSpec((KH * KW, Cin, Cout), lambda n: (0, 0, 0)),   # resident weights
            pl.BlockSpec((1, Cout), lambda n: (0, 0)),
            pl.BlockSpec((Cout, LANE), lambda n: (0, 0)),
            pl.BlockSpec((1, LANE), lambda n: (0, 0)),
        ],
        out_specs=pl.BlockSpec((1, 1, LANE), lambda n: (n, 0, 0)),
        compiler_params=pltpu.CompilerParams(
            dimension_semantics=("parallel",)),                        # 2 TCs on v7x
    )(xp, wc, bc, wh, bh)

    return out.reshape(N, LANE)[:, :num_classes]


def init_params(key, cin=4, cout=32, kh=3, kw=3, num_classes=5):
    k1, k2, k3, k4 = jax.random.split(key, 4)
    w_conv = jax.random.normal(k1, (kh * kw * cin, cout), jnp.float32) * 0.05
    b_conv = jax.random.normal(k2, (1, cout), jnp.float32) * 0.01
    w_head = jax.random.normal(k3, (cout, num_classes), jnp.float32) * 0.05
    b_head = jax.random.normal(k4, (1, num_classes), jnp.float32) * 0.01
    return dict(w_conv=w_conv, b_conv=b_conv, w_head=w_head, b_head=b_head)


if __name__ == "__main__":
    key = jax.random.PRNGKey(0)
    kx, kp = jax.random.split(key)

    x = jax.random.normal(kx, (2, 4, 16, 16), jnp.float32)   # NCHW input
    params = init_params(kp)

    fwd = jax.jit(finetune_model_forward)
    out = jax.block_until_ready(fwd(x, params))

    # Pure-JAX reference mirroring the kernel's numerics (bf16 matmul operands,
    # f32 accumulation) so the comparison stays tight.
    def ref_forward(x_nchw, p):
        xh = jnp.transpose(x_nchw, (0, 2, 3, 1)).astype(jnp.bfloat16).astype(jnp.float32)
        w = p["w_conv"].astype(jnp.bfloat16).astype(jnp.float32).reshape(3, 3, 4, 32)
        conv = jax.lax.conv_general_dilated(
            xh, w, window_strides=(1, 1), padding="SAME",
            dimension_numbers=("NHWC", "HWIO", "NHWC"),
            precision=jax.lax.Precision.HIGHEST)
        conv = jnp.maximum(conv + p["b_conv"].reshape(1, 1, 1, -1), 0.0)
        pooled = jnp.mean(conv, axis=(1, 2))
        pooled = pooled.astype(jnp.bfloat16).astype(jnp.float32)
        wh = p["w_head"].astype(jnp.bfloat16).astype(jnp.float32)
        return jnp.dot(pooled, wh, precision=jax.lax.Precision.HIGHEST) + p["b_head"]

    ref = ref_forward(x, params)
    assert out.shape == (2, 5), out.shape
    assert jnp.allclose(out, ref, atol=5e-4, rtol=5e-3), "mismatch vs reference"
    print("KERNEL_OK")
</pallas_src>

<mosaic_0001>
module attributes {stable_mosaic.version = 11 : i64} {
  func.func @_fused_kernel(%arg0: i32, %arg1: memref<1x18x18x4xbf16, #tpu.memory_space<vmem>>, %arg2: memref<9x4x32xbf16, #tpu.memory_space<vmem>>, %arg3: memref<1x32xf32, #tpu.memory_space<vmem>>, %arg4: memref<32x128xbf16, #tpu.memory_space<vmem>>, %arg5: memref<1x128xf32, #tpu.memory_space<vmem>>, %arg6: memref<1x1x128xf32, #tpu.memory_space<vmem>>) attributes {dimension_semantics = [#tpu.dimension_semantics<parallel>], iteration_bounds = array<i64: 2>, scalar_prefetch = 0 : i64, scratch_operands = 0 : i64, tpu.core_type = #tpu.core_type<tc>, window_params = [{transform_indices = @transform_0, window_bounds = array<i64: 1, 18, 18, 4>}, {pipeline_mode = #tpu.pipeline_mode<synchronous>, transform_indices = @transform_1, window_bounds = array<i64: 9, 4, 32>}, {pipeline_mode = #tpu.pipeline_mode<synchronous>, transform_indices = @transform_2, window_bounds = array<i64: 1, 32>}, {pipeline_mode = #tpu.pipeline_mode<synchronous>, transform_indices = @transform_3, window_bounds = array<i64: 32, 128>}, {pipeline_mode = #tpu.pipeline_mode<synchronous>, transform_indices = @transform_4, window_bounds = array<i64: 1, 128>}, {transform_indices = @transform_5, window_bounds = array<i64: 1, 1, 128>}]} {
    %c0 = arith.constant 0 : index
    %c0_0 = arith.constant 0 : index
    %0 = vector.load %arg3[%c0, %c0_0] : memref<1x32xf32, #tpu.memory_space<vmem>>, vector<1x32xf32>
    %1 = vector.shape_cast %0 : vector<1x32xf32> to vector<1x32xf32>
    %2 = vector.broadcast %1 : vector<1x32xf32> to vector<256x32xf32>
    %c0_1 = arith.constant 0 : index
    %c0_2 = arith.constant 0 : index
    %c0_3 = arith.constant 0 : index
    %c0_4 = arith.constant 0 : index
    %3 = vector.load %arg1[%c0_1, %c0_2, %c0_3, %c0_4] : memref<1x18x18x4xbf16, #tpu.memory_space<vmem>>, vector<1x16x16x4xbf16>
    %4 = vector.shape_cast %3 : vector<1x16x16x4xbf16> to vector<16x16x4xbf16>
    %5 = vector.shape_cast %4 : vector<16x16x4xbf16> to vector<256x4xbf16>
    %c0_5 = arith.constant 0 : index
    %c0_6 = arith.constant 0 : index
    %c0_7 = arith.constant 0 : index
    %6 = vector.load %arg2[%c0_5, %c0_6, %c0_7] : memref<9x4x32xbf16, #tpu.memory_space<vmem>>, vector<1x4x32xbf16>
    %7 = vector.shape_cast %6 : vector<1x4x32xbf16> to vector<4x32xbf16>
    %cst = arith.constant dense<0.000000e+00> : vector<256x32xf32>
    %8 = tpu.matmul %5, %7, %cst {dimension_numbers = #tpu.dot_dimension_numbers<[1], [0], [0], [1], [0, 0, 1, 1], [], []>} : vector<256x4xbf16>, vector<4x32xbf16>, vector<256x32xf32> -> vector<256x32xf32>
    %9 = arith.addf %2, %8 : vector<256x32xf32>
    %c0_8 = arith.constant 0 : index
    %c0_9 = arith.constant 0 : index
    %c1 = arith.constant 1 : index
    %c0_10 = arith.constant 0 : index
    %10 = vector.load %arg1[%c0_8, %c0_9, %c1, %c0_10] : memref<1x18x18x4xbf16, #tpu.memory_space<vmem>>, vector<1x16x16x4xbf16>
    %11 = vector.shape_cast %10 : vector<1x16x16x4xbf16> to vector<16x16x4xbf16>
    %12 = vector.shape_cast %11 : vector<16x16x4xbf16> to vector<256x4xbf16>
    %c1_11 = arith.constant 1 : index
    %c0_12 = arith.constant 0 : index
    %c0_13 = arith.constant 0 : index
    %13 = vector.load %arg2[%c1_11, %c0_12, %c0_13] : memref<9x4x32xbf16, #tpu.memory_space<vmem>>, vector<1x4x32xbf16>
    %14 = vector.shape_cast %13 : vector<1x4x32xbf16> to vector<4x32xbf16>
    %cst_14 = arith.constant dense<0.000000e+00> : vector<256x32xf32>
    %15 = tpu.matmul %12, %14, %cst_14 {dimension_numbers = #tpu.dot_dimension_numbers<[1], [0], [0], [1], [0, 0, 1, 1], [], []>} : vector<256x4xbf16>, vector<4x32xbf16>, vector<256x32xf32> -> vector<256x32xf32>
    %16 = arith.addf %9, %15 : vector<256x32xf32>
    %c0_15 = arith.constant 0 : index
    %c0_16 = arith.constant 0 : index
    %c2 = arith.constant 2 : index
    %c0_17 = arith.constant 0 : index
    %17 = vector.load %arg1[%c0_15, %c0_16, %c2, %c0_17] : memref<1x18x18x4xbf16, #tpu.memory_space<vmem>>, vector<1x16x16x4xbf16>
    %18 = vector.shape_cast %17 : vector<1x16x16x4xbf16> to vector<16x16x4xbf16>
    %19 = vector.shape_cast %18 : vector<16x16x4xbf16> to vector<256x4xbf16>
    %c2_18 = arith.constant 2 : index
    %c0_19 = arith.constant 0 : index
    %c0_20 = arith.constant 0 : index
    %20 = vector.load %arg2[%c2_18, %c0_19, %c0_20] : memref<9x4x32xbf16, #tpu.memory_space<vmem>>, vector<1x4x32xbf16>
    %21 = vector.shape_cast %20 : vector<1x4x32xbf16> to vector<4x32xbf16>
    %cst_21 = arith.constant dense<0.000000e+00> : vector<256x32xf32>
    %22 = tpu.matmul %19, %21, %cst_21 {dimension_numbers = #tpu.dot_dimension_numbers<[1], [0], [0], [1], [0, 0, 1, 1], [], []>} : vector<256x4xbf16>, vector<4x32xbf16>, vector<256x32xf32> -> vector<256x32xf32>
    %23 = arith.addf %16, %22 : vector<256x32xf32>
    %c0_22 = arith.constant 0 : index
    %c1_23 = arith.constant 1 : index
    %c0_24 = arith.constant 0 : index
    %c0_25 = arith.constant 0 : index
    %24 = vector.load %arg1[%c0_22, %c1_23, %c0_24, %c0_25] : memref<1x18x18x4xbf16, #tpu.memory_space<vmem>>, vector<1x16x16x4xbf16>
    %25 = vector.shape_cast %24 : vector<1x16x16x4xbf16> to vector<16x16x4xbf16>
    %26 = vector.shape_cast %25 : vector<16x16x4xbf16> to vector<256x4xbf16>
    %c3 = arith.constant 3 : index
    %c0_26 = arith.constant 0 : index
    %c0_27 = arith.constant 0 : index
    %27 = vector.load %arg2[%c3, %c0_26, %c0_27] : memref<9x4x32xbf16, #tpu.memory_space<vmem>>, vector<1x4x32xbf16>
    %28 = vector.shape_cast %27 : vector<1x4x32xbf16> to vector<4x32xbf16>
    %cst_28 = arith.constant dense<0.000000e+00> : vector<256x32xf32>
    %29 = tpu.matmul %26, %28, %cst_28 {dimension_numbers = #tpu.dot_dimension_numbers<[1], [0], [0], [1], [0, 0, 1, 1], [], []>} : vector<256x4xbf16>, vector<4x32xbf16>, vector<256x32xf32> -> vector<256x32xf32>
    %30 = arith.addf %23, %29 : vector<256x32xf32>
    %c0_29 = arith.constant 0 : index
    %c1_30 = arith.constant 1 : index
    %c1_31 = arith.constant 1 : index
    %c0_32 = arith.constant 0 : index
    %31 = vector.load %arg1[%c0_29, %c1_30, %c1_31, %c0_32] : memref<1x18x18x4xbf16, #tpu.memory_space<vmem>>, vector<1x16x16x4xbf16>
    %32 = vector.shape_cast %31 : vector<1x16x16x4xbf16> to vector<16x16x4xbf16>
    %33 = vector.shape_cast %32 : vector<16x16x4xbf16> to vector<256x4xbf16>
    %c4 = arith.constant 4 : index
    %c0_33 = arith.constant 0 : index
    %c0_34 = arith.constant 0 : index
    %34 = vector.load %arg2[%c4, %c0_33, %c0_34] : memref<9x4x32xbf16, #tpu.memory_space<vmem>>, vector<1x4x32xbf16>
    %35 = vector.shape_cast %34 : vector<1x4x32xbf16> to vector<4x32xbf16>
    %cst_35 = arith.constant dense<0.000000e+00> : vector<256x32xf32>
    %36 = tpu.matmul %33, %35, %cst_35 {dimension_numbers = #tpu.dot_dimension_numbers<[1], [0], [0], [1], [0, 0, 1, 1], [], []>} : vector<256x4xbf16>, vector<4x32xbf16>, vector<256x32xf32> -> vector<256x32xf32>
    %37 = arith.addf %30, %36 : vector<256x32xf32>
    %c0_36 = arith.constant 0 : index
    %c1_37 = arith.constant 1 : index
    %c2_38 = arith.constant 2 : index
    %c0_39 = arith.constant 0 : index
    %38 = vector.load %arg1[%c0_36, %c1_37, %c2_38, %c0_39] : memref<1x18x18x4xbf16, #tpu.memory_space<vmem>>, vector<1x16x16x4xbf16>
    %39 = vector.shape_cast %38 : vector<1x16x16x4xbf16> to vector<16x16x4xbf16>
    %40 = vector.shape_cast %39 : vector<16x16x4xbf16> to vector<256x4xbf16>
    %c5 = arith.constant 5 : index
    %c0_40 = arith.constant 0 : index
    %c0_41 = arith.constant 0 : index
    %41 = vector.load %arg2[%c5, %c0_40, %c0_41] : memref<9x4x32xbf16, #tpu.memory_space<vmem>>, vector<1x4x32xbf16>
    %42 = vector.shape_cast %41 : vector<1x4x32xbf16> to vector<4x32xbf16>
    %cst_42 = arith.constant dense<0.000000e+00> : vector<256x32xf32>
    %43 = tpu.matmul %40, %42, %cst_42 {dimension_numbers = #tpu.dot_dimension_numbers<[1], [0], [0], [1], [0, 0, 1, 1], [], []>} : vector<256x4xbf16>, vector<4x32xbf16>, vector<256x32xf32> -> vector<256x32xf32>
    %44 = arith.addf %37, %43 : vector<256x32xf32>
    %c0_43 = arith.constant 0 : index
    %c2_44 = arith.constant 2 : index
    %c0_45 = arith.constant 0 : index
    %c0_46 = arith.constant 0 : index
    %45 = vector.load %arg1[%c0_43, %c2_44, %c0_45, %c0_46] : memref<1x18x18x4xbf16, #tpu.memory_space<vmem>>, vector<1x16x16x4xbf16>
    %46 = vector.shape_cast %45 : vector<1x16x16x4xbf16> to vector<16x16x4xbf16>
    %47 = vector.shape_cast %46 : vector<16x16x4xbf16> to vector<256x4xbf16>
    %c6 = arith.constant 6 : index
    %c0_47 = arith.constant 0 : index
    %c0_48 = arith.constant 0 : index
    %48 = vector.load %arg2[%c6, %c0_47, %c0_48] : memref<9x4x32xbf16, #tpu.memory_space<vmem>>, vector<1x4x32xbf16>
    %49 = vector.shape_cast %48 : vector<1x4x32xbf16> to vector<4x32xbf16>
    %cst_49 = arith.constant dense<0.000000e+00> : vector<256x32xf32>
    %50 = tpu.matmul %47, %49, %cst_49 {dimension_numbers = #tpu.dot_dimension_numbers<[1], [0], [0], [1], [0, 0, 1, 1], [], []>} : vector<256x4xbf16>, vector<4x32xbf16>, vector<256x32xf32> -> vector<256x32xf32>
    %51 = arith.addf %44, %50 : vector<256x32xf32>
    %c0_50 = arith.constant 0 : index
    %c2_51 = arith.constant 2 : index
    %c1_52 = arith.constant 1 : index
    %c0_53 = arith.constant 0 : index
    %52 = vector.load %arg1[%c0_50, %c2_51, %c1_52, %c0_53] : memref<1x18x18x4xbf16, #tpu.memory_space<vmem>>, vector<1x16x16x4xbf16>
    %53 = vector.shape_cast %52 : vector<1x16x16x4xbf16> to vector<16x16x4xbf16>
    %54 = vector.shape_cast %53 : vector<16x16x4xbf16> to vector<256x4xbf16>
    %c7 = arith.constant 7 : index
    %c0_54 = arith.constant 0 : index
    %c0_55 = arith.constant 0 : index
    %55 = vector.load %arg2[%c7, %c0_54, %c0_55] : memref<9x4x32xbf16, #tpu.memory_space<vmem>>, vector<1x4x32xbf16>
    %56 = vector.shape_cast %55 : vector<1x4x32xbf16> to vector<4x32xbf16>
    %cst_56 = arith.constant dense<0.000000e+00> : vector<256x32xf32>
    %57 = tpu.matmul %54, %56, %cst_56 {dimension_numbers = #tpu.dot_dimension_numbers<[1], [0], [0], [1], [0, 0, 1, 1], [], []>} : vector<256x4xbf16>, vector<4x32xbf16>, vector<256x32xf32> -> vector<256x32xf32>
    %58 = arith.addf %51, %57 : vector<256x32xf32>
    %c0_57 = arith.constant 0 : index
    %c2_58 = arith.constant 2 : index
    %c2_59 = arith.constant 2 : index
    %c0_60 = arith.constant 0 : index
    %59 = vector.load %arg1[%c0_57, %c2_58, %c2_59, %c0_60] : memref<1x18x18x4xbf16, #tpu.memory_space<vmem>>, vector<1x16x16x4xbf16>
    %60 = vector.shape_cast %59 : vector<1x16x16x4xbf16> to vector<16x16x4xbf16>
    %61 = vector.shape_cast %60 : vector<16x16x4xbf16> to vector<256x4xbf16>
    %c8 = arith.constant 8 : index
    %c0_61 = arith.constant 0 : index
    %c0_62 = arith.constant 0 : index
    %62 = vector.load %arg2[%c8, %c0_61, %c0_62] : memref<9x4x32xbf16, #tpu.memory_space<vmem>>, vector<1x4x32xbf16>
    %63 = vector.shape_cast %62 : vector<1x4x32xbf16> to vector<4x32xbf16>
    %cst_63 = arith.constant dense<0.000000e+00> : vector<256x32xf32>
    %64 = tpu.matmul %61, %63, %cst_63 {dimension_numbers = #tpu.dot_dimension_numbers<[1], [0], [0], [1], [0, 0, 1, 1], [], []>} : vector<256x4xbf16>, vector<4x32xbf16>, vector<256x32xf32> -> vector<256x32xf32>
    %65 = arith.addf %58, %64 : vector<256x32xf32>
    %cst_64 = arith.constant 0.000000e+00 : f32
    %66 = vector.broadcast %cst_64 : f32 to vector<256x32xf32>
    %67 = arith.maximumf %65, %66 : vector<256x32xf32>
    %cst_65 = arith.constant dense<0.000000e+00> : vector<32xf32>
    %68 = vector.multi_reduction <add>, %67, %cst_65 [0] : vector<256x32xf32> to vector<32xf32>
    %69 = vector.shape_cast %68 : vector<32xf32> to vector<1x32xf32>
    %cst_66 = arith.constant 2.560000e+02 : f32
    %70 = vector.broadcast %cst_66 : f32 to vector<1x32xf32>
    %71 = arith.divf %69, %70 : vector<1x32xf32>
    %72 = arith.truncf %71 : vector<1x32xf32> to vector<1x32xbf16>
    %c0_67 = arith.constant 0 : index
    %c0_68 = arith.constant 0 : index
    %73 = vector.load %arg4[%c0_67, %c0_68] : memref<32x128xbf16, #tpu.memory_space<vmem>>, vector<32x128xbf16>
    %cst_69 = arith.constant dense<0.000000e+00> : vector<1x128xf32>
    %74 = tpu.matmul %72, %73, %cst_69 {dimension_numbers = #tpu.dot_dimension_numbers<[1], [0], [0], [1], [0, 0, 1, 1], [], []>} : vector<1x32xbf16>, vector<32x128xbf16>, vector<1x128xf32> -> vector<1x128xf32>
    %c0_70 = arith.constant 0 : index
    %c0_71 = arith.constant 0 : index
    %75 = vector.load %arg5[%c0_70, %c0_71] : memref<1x128xf32, #tpu.memory_space<vmem>>, vector<1x128xf32>
    %76 = arith.addf %74, %75 : vector<1x128xf32>
    %c0_72 = arith.constant 0 : index
    %c0_73 = arith.constant 0 : index
    %c0_74 = arith.constant 0 : index
    %77 = vector.load %arg6[%c0_72, %c0_73, %c0_74] : memref<1x1x128xf32, #tpu.memory_space<vmem>>, vector<1x1x128xf32>
    %78 = vector.shape_cast %77 : vector<1x1x128xf32> to vector<1x128xf32>
    %79 = vector.shape_cast %76 : vector<1x128xf32> to vector<1x1x128xf32>
    tpu.vector_store %arg6[%c0_72, %c0_73, %c0_74], %79 {strides = array<i32>} : memref<1x1x128xf32, #tpu.memory_space<vmem>>, vector<1x1x128xf32>,
    return
  }
  func.func @transform_0(%arg0: i32) -> (i32, i32, i32, i32) {
    %c0_i32 = arith.constant 0 : i32
    %c0_i32_0 = arith.constant 0 : i32
    %c0_i32_1 = arith.constant 0 : i32
    %c0_i32_2 = arith.constant 0 : i32
    return %arg0, %c0_i32, %c0_i32_0, %c0_i32_1 : i32, i32, i32, i32
  }
  func.func @transform_1(%arg0: i32) -> (i32, i32, i32) {
    %c0_i32 = arith.constant 0 : i32
    %c0_i32_0 = arith.constant 0 : i32
    %c0_i32_1 = arith.constant 0 : i32
    %c0_i32_2 = arith.constant 0 : i32
    return %c0_i32, %c0_i32_0, %c0_i32_1 : i32, i32, i32
  }
  func.func @transform_2(%arg0: i32) -> (i32, i32) {
    %c0_i32 = arith.constant 0 : i32
    %c0_i32_0 = arith.constant 0 : i32
    %c0_i32_1 = arith.constant 0 : i32
    return %c0_i32, %c0_i32_0 : i32, i32
  }
  func.func @transform_3(%arg0: i32) -> (i32, i32) {
    %c0_i32 = arith.constant 0 : i32
    %c0_i32_0 = arith.constant 0 : i32
    %c0_i32_1 = arith.constant 0 : i32
    return %c0_i32, %c0_i32_0 : i32, i32
  }
  func.func @transform_4(%arg0: i32) -> (i32, i32) {
    %c0_i32 = arith.constant 0 : i32
    %c0_i32_0 = arith.constant 0 : i32
    %c0_i32_1 = arith.constant 0 : i32
    return %c0_i32, %c0_i32_0 : i32, i32
  }
  func.func @transform_5(%arg0: i32) -> (i32, i32, i32) {
    %c0_i32 = arith.constant 0 : i32
    %c0_i32_0 = arith.constant 0 : i32
    %c0_i32_1 = arith.constant 0 : i32
    return %arg0, %c0_i32, %c0_i32_0 : i32, i32, i32
  }
}

</mosaic_0001>

<bundles_post_ra>
// kernel: finetune_model_forward.1
= control target key start
LH: loop header
LB: loop body
LE: loop exit
PB: predicated region body
PF: predicated region fallthrough
CT: control target
= control target key end

     0   :  { %10 = vsyncpa [#allocation3], 0  ;;  %s8485_s0 = inlined_call_operand.vmem [shape: bf16[2,18,18,4], index: 0, kind: input, shape index: {}]   ;;  %s8486_s1 = inlined_call_operand.vmem [shape: bf16[9,4,32], index: 1, kind: input, shape index: {}]   ;;  %s8487_s2 = inlined_call_operand.vmem [shape: f32[1,32], index: 2, kind: input, shape index: {}]   ;;  %s8488_s3 = inlined_call_operand.vmem [shape: bf16[32,128], index: 3, kind: input, shape index: {}]   ;;  %s8489_s4 = inlined_call_operand.vmem [shape: f32[1,128], index: 4, kind: input, shape index: {}]   ;;  %s8490_s5 = inlined_call_operand.hbm [shape: f32[2,1,128], index: 5, kind: output, shape index: {}]  }
   0x1   :  { %12 = vsyncpa [#allocation3 + $0x1], 0  ;;  %s6657_s18 = smov 0   ;;  %s6659_s19 = smov 0  }
   0x2   :  { %s6661_s20 = smov 0   ;;  %s6663_s21 = smov 0  }
   0x3 LB: > { %s6678_s22 = sadd.s32 4294967295, %s6622_s21   ;;  %s5135_s23 = sadd.s32 4294967294, %s6622_s21   ;;  %s6622_s21 = sphi %s6663_s21, %s8510_s21   ;;  %s6618_s20 = sphi %s6661_s20, %s8509_s20   ;;  %s6614_s19 = sphi %s6659_s19, %s8508_s19   ;;  %s6610_s18 = sphi %s6657_s18, %s8507_s18  }
   0x4   : > { %s6682_s24 = sadd.s32 1, %s6622_s21   ;;  %s135_s25 = sadd.s32 1, %s6618_s20 }
   0x5   : > { %s132_s26 = ssub.s32 %s6622_s21, %s6682_s24  ;;  %p145_p0 = scmp.ne.s32.totalorder %s6618_s20, %s6614_s19 }
   0x6   : > { %p133_p1 = scmp.eq.s32.totalorder %s132_s26, 0  ;;  %p146_p2 = scmp.eq.s32.totalorder %s6678_s22, 1 }
   0x7   : > { %p151_p3 = scmp.ne.s32.totalorder %s6614_s19, %s6610_s18  ;;  %p152_p4 = scmp.eq.s32.totalorder %s5135_s23, 1 }
   0x8   : > { %s6693_s27 = scalar_select %p133_p1, %s6618_s20, %s135_s25  }
   0x9   : > { %p6695_p5 = por %p146_p2, %p145_p0  ;;  %p6699_p6 = por %p152_p4, %p151_p3 }
   0xa   : > { %p5138_p7 = scmp.ge.s32.totalorder %s6622_s21, 1  ;;  %p190_p8 = scmp.lt.s32.totalorder %s6622_s21, 3 }
   0xc   : > { %p191_p9 = pnand %p5138_p7, %p190_p8 }
   0xe   : > { %194 = sbr.rel (%p191_p9) target bundleno = 818 (0x332), region = 40 }
  0x15   : > { %v262_v0 = vld [vmem:[%s8486_s1] sm:$0x3]  ;;  %vm392_vm0 = vcmask 1041408   ;;  %p217_p10 = scmp.lt.s32.totalorder %s6678_s22, 1  ;;  %v5368_v2 = vld [vmem:[%s8486_s1 + $0x8] sm:$0x3] }
  0x16   : > { %6443 = vmatprep.subr.msk.bf16.mxu1 %vm392_vm0, %v262_v0  ;;  %v394_v1 = vsel %vm392_vm0, %v262_v0, 0  ;;  %6447 = vmatprep.subr.msk.bf16.mxu0 %vm392_vm0, %v5368_v2  ;;  %v6717_v3 = vsel %vm392_vm0, %v5368_v2, 0  ;;  %v5433_v4 = vld [vmem:[%s8486_s1 + $0xa] sm:$0x3]  ;;  %v5173_v5 = vld [vmem:[%s8486_s1 + $0x2] sm:$0x3] }
  0x17   : > { %5840 = vmatpush3.bf16.msra.mxu1 %v394_v1  ;;  %s218_s9 = scalar_select %p217_p10, %s6678_s22, 1  ;;  %5976 = vmatpush3.bf16.msra.mxu0 %v6717_v3  ;;  %vm343_vm1 = vcmask 31744   ;;  %vm637_vm2 = vsmask.f32 3328  ;;  %vm638_vm3 = vsmask.f32 7440 }
  0x18   : > { %6449 = vmatprep.subr.msk.bf16.mxu0 %vm392_vm0, %v5433_v4  ;;  %6444 = vmatprep.subr.msk.bf16.mxu1 %vm392_vm0, %v5173_v5  ;;  %v6736_v6 = vld [vmem:[%s8486_s1 + $0xc] sm:$0x3]  ;;  %v5222_v8 = vld [vmem:[%s8486_s1 + $0x4] sm:$0x3]  ;;  %v1123_v10 = vsel %vm392_vm0, %v5173_v5, 0  ;;  %v6748_v12 = vsel %vm392_vm0, %v5433_v4, 0  ;;  %vm6783_vm6 = vmor %vm637_vm2, %vm638_vm3 }
  0x19   : > { %s6453_s14 = smul.u32 216, %s218_s9  ;;  %v6752_v13 = vsel %vm392_vm0, %v6736_v6, 0  ;;  %vm1382_vm4 = vcmask 1042432   ;;  %vm1383_vm5 = vcmask 1046532   ;;  %v6772_v26 = vsel %vm392_vm0, %v5222_v8, 0  ;;  %s215_s26 = sand.u32 1, %s6614_s19  }
  0x1a   : > { %vm6824_vm7 = vmor %vm1382_vm4, %vm1383_vm5  ;;  %vm6625_vm8 = vmmov 0   ;;  %vm4933_vm9 = vcmask 261120   ;;  %s5680_s7 = sshll.u32 %s6678_s22, 4  ;;  %s216_s8 = scalar_lea.vmem [#allocation2], %s215_s26 }
  0x1b   : > { %s6731_s17 = scalar_lea.vmem %s8485_s0, %s6453_s14  ;;  %s5080_s9 = sshll.u32 %s216_s8, 4  ;;  %s8445_s9 = int_to_ptr.vmem [resolvable:$true] %s5080_s9 }
  0x1c   : > { %v6495_v7 = vld [vmem:[%s6731_s17] sm:$0xff]   ;;  %v6496_v9 = vld [vmem:[%s6731_s17 + $0xc] sm:$0xff]   ;;  %v6497_v11 = vld [vmem:[%s6731_s17 + $0x18] sm:$0xff]   ;;  %s8443_s12 = scalar_lea.hbm %s8490_s5, %s5680_s7  ;;  %s5068_s13 = scalar_lea.sflag [#allocation3], %s215_s26 }
  0x1d   : > { %5841 = vmatprep.mubr.msk.bf16.mxu1 %vm343_vm1, %v6495_v7  ;;  %v5320_v14 = vld [vmem:[%s6731_s17 + $0xc] sm:$0xf]  ;;  %v6757_v15 = vld [vmem:[%s6731_s17 + $0x10] sm:$0xf]  ;;  %v6760_v16 = vld [vmem:[%s6731_s17 + $0x14] sm:$0x1] }
  0x1e   : > { %5842 = vmatmul.mubr.msk.bf16.vlgmr.msra.gmra.mrb[0].mxu1 %vm343_vm1, %v6496_v9  ;;  %v2199_v17 = vshrl.u32 %v5320_v14, 16  ;;  %v2202_v18 = vshll.u32 %v5320_v14, 16  ;;  %v2208_v19 = vshll.u32 %v6757_v15, 16  ;;  %v2212_v20 = vshrl.u32 %v6757_v15, 16  ;;  %v5323_v21 = vld [vmem:[%s6731_s17 + $0x18] sm:$0xf] }
  0x1f   : > { %5845 = vmatprep.mubr.msk.bf16.mxu1 %vm343_vm1, %v6497_v11  ;;  %5874 = vmatpush3.bf16.msra.mxu1 %v1123_v10  ;;  %v6498_v22 = vld [vmem:[%s6731_s17 + $0x24] sm:$0xff]   ;;  %v2218_v23 = vshll.u32 %v6760_v16, 16  ;;  %v6769_v24 = vld [vmem:[%s6731_s17 + $0x1c] sm:$0xf]  ;;  %v2223_v25 = vshrl.u32 %v5323_v21, 16  ;;  %v2226_v34 = vshll.u32 %v5323_v21, 16 }
  0x20   : > { %6445 = vmatprep.subr.msk.bf16.mxu1 %vm392_vm0, %v5222_v8  ;;  %v2201_v27 = vrot.slane %v2199_v17, 4  ;;  %v2204_v28 = vrot.slane %v2202_v18, 5  ;;  %v2210_v29 = vrot.slane %v2208_v19, 5  ;;  %v2214_v30 = vrot.slane %v2212_v20, 4  ;;  %v6775_v31 = vld [vmem:[%s6731_s17 + $0x20] sm:$0x1] }
  0x21   : > { %v2220_v32 = vrot.slane %v2218_v23, 5  ;;  %v2225_v33 = vrot.slane %v2223_v25, 4  ;;  %v2232_v35 = vshll.u32 %v6769_v24, 16  ;;  %v2236_v38 = vshrl.u32 %v6769_v24, 16  ;;  %v6499_v40 = vld [vmem:[%s6731_s17 + $0x30] sm:$0xff]   ;;  %v6500_v63 = vld [vmem:[%s6731_s17 + $0x3c] sm:$0xff]  }
  0x22   : > { %v2205_v36 = vor.u32 %v2204_v28, %v2201_v27  ;;  %v2215_v37 = vor.u32 %v2214_v30, %v2210_v29  ;;  %v2242_v39 = vshll.u32 %v6775_v31, 16  ;;  %v2942_v42 = vrot.slane %v6757_v15, 5  ;;  %v5326_v53 = vld [vmem:[%s6731_s17 + $0x24] sm:$0xf]  ;;  %v6796_v54 = vld [vmem:[%s6731_s17 + $0x28] sm:$0xf] }
  0x23   : > { %v2228_v43 = vrot.slane %v2226_v34, 5  ;;  %v2234_v44 = vrot.slane %v2232_v35, 5  ;;  %v2949_v45 = vrot.slane %v6769_v24, 5  ;;  %v2238_v48 = vrot.slane %v2236_v38, 4  ;;  %v6803_v58 = vld [vmem:[%s6731_s17 + $0x2c] sm:$0x1] }
  0x24   : > { %v2206_v46 = vrot.slane %v2205_v36, 4  ;;  %v2216_v47 = vrot.slane %v2215_v37, 4  ;;  %v2952_v49 = vrot.slane %v6775_v31, 5  ;;  %v2244_v51 = vrot.slane %v2242_v39, 5  ;;  %v5329_v60 = vld [vmem:[%s6731_s17 + $0x30] sm:$0xf] }
  0x25   : > { %v2229_v50 = vor.u32 %v2228_v43, %v2225_v33  ;;  %v2951_v52 = vrot.slane %v2949_v45, 4  ;;  %v2239_v57 = vor.u32 %v2238_v48, %v2234_v44  ;;  %v2247_v59 = vshrl.u32 %v5326_v53, 16  ;;  %v6809_v2 = vld [vmem:[%s6731_s17 + $0x34] sm:$0xf]  ;;  %v6814_v9 = vld [vmem:[%s6731_s17 + $0x38] sm:$0x1] }
  0x26   : > { %5846 = vmatmul.mubr.msk.bf16.gmra.mrb[4].mxu1 %vm343_vm1, %v6498_v22  ;;  %v2211_v55 = vsel %vm6783_vm6, %v2206_v46, %v2210_v29  ;;  %v2221_v56 = vsel %vm6783_vm6, %v2216_v47, %v2220_v32  ;;  %v2250_v0 = vshll.u32 %v5326_v53, 16  ;;  %v2256_v1 = vshll.u32 %v6796_v54, 16  ;;  %v6501_v18 = vld [vmem:[%s6731_s17 + $0x48] sm:$0xff]   ;;  %v5332_v34 = vld [vmem:[%s6731_s17 + $0x3c] sm:$0xf]  ;;  %v6543_v23 = vld [vmem:[%s8488_s3] sm:$0xff]  }
  0x27   : > { %5849 = vmatprep.mubr.msk.bf16.mxu1 %vm343_vm1, %v6499_v40  ;;  %v5369_v61 = vcombine.low %v2211_v55, %v2221_v56  ;;  %v2230_v62 = vrot.slane %v2229_v50, 4  ;;  %v2240_v4 = vrot.slane %v2239_v57, 4  ;;  %v2249_v5 = vrot.slane %v2247_v59, 4  ;;  %v6837_v38 = vld [vmem:[%s6731_s17 + $0x40] sm:$0xf]  ;;  %v6502_v50 = vld [vmem:[%s6731_s17 + $0x54] sm:$0xff]  }
  0x28   : > { %v2260_v7 = vshrl.u32 %v6796_v54, 16  ;;  %v2266_v8 = vshll.u32 %v6803_v58, 16  ;;  %v2252_v11 = vrot.slane %v2250_v0, 5  ;;  %v2258_v14 = vrot.slane %v2256_v1, 5  ;;  %v6845_v47 = vld [vmem:[%s6731_s17 + $0x44] sm:$0x1] }
  0x29   : > { %5977 = vmatprep.mubr.msk.bf16.mxu0 %vm343_vm1, %v5369_v61  ;;  %v2235_v10 = vsel %vm6783_vm6, %v2230_v62, %v2234_v44  ;;  %v2271_v17 = vshrl.u32 %v5329_v60, 16  ;;  %v2245_v19 = vsel %vm6783_vm6, %v2240_v4, %v2244_v51  ;;  %v2274_v22 = vshll.u32 %v5329_v60, 16  ;;  %v6858_v59 = vld [vmem:[%s6731_s17 + $0x4c] sm:$0xf]  ;;  %v6861_v0 = vld [vmem:[%s6731_s17 + $0x50] sm:$0x1] }
  0x2a   : > { %v2262_v20 = vrot.slane %v2260_v7, 4  ;;  %v2268_v21 = vrot.slane %v2266_v8, 5  ;;  %v5370_v25 = vcombine.low %v2235_v10, %v2245_v19  ;;  %v2253_v27 = vor.u32 %v2252_v11, %v2249_v5  ;;  %v6503_v1 = vld [vmem:[%s6731_s17 + $0x60] sm:$0xff]   ;;  %s6560_s22 = scalar_lea.vmem %s8445_s9, 16  ;;  %s6626_s14 = smov [#allocation2]  }
  0x2b   : > { %v2273_v28 = vrot.slane %v2271_v17, 4  ;;  %v2280_v29 = vshll.u32 %v6809_v2, 16  ;;  %v2276_v31 = vrot.slane %v2274_v22, 5  ;;  %v2284_v32 = vshrl.u32 %v6809_v2, 16  ;;  %p6561_p11 = scmp.ne.s32.totalorder %s8445_s9, %s6560_s22  ;;  %s6564_s15 = sshll.u32 %s6626_s14, 4  ;;  %s6565_s15 = int_to_ptr.vmem [resolvable:$false] %s6564_s15 }
  0x2c   : > { %v2263_v30 = vor.u32 %v2262_v20, %v2258_v14  ;;  %v2290_v33 = vshll.u32 %v6814_v9, 16  ;;  %v2945_v35 = vrot.slane %v6760_v16, 5  ;;  %5978 = vmatmul.mubr.msk.bf16.vlgmr.msra.gmra.mrb[0].mxu0 %vm343_vm1, %v5370_v25  ;;  %v2254_v36 = vrot.slane %v2253_v27, 4  ;;  %s6566_s16 = scalar_lea.vmem %s6565_s15, 32  ;;  %p6567_p0 = scmp.lt.s32.totalorder %s8445_s9, %s6565_s15 }
  0x2d   : > { %v2282_v37 = vrot.slane %v2280_v29, 5  ;;  %v6841_v39 = vsel %vm6824_vm7, %v2951_v52, %v2952_v49  ;;  %6010 = vmatpush3.bf16.msra.mxu0 %v6748_v12  ;;  %v2277_v43 = vor.u32 %v2276_v31, %v2273_v28  ;;  %v2286_v44 = vrot.slane %v2284_v32, 4  ;;  %v5335_v52 = vld [vmem:[%s6731_s17 + $0x48] sm:$0xf]  ;;  %v6876_v29 = vld [vmem:[%s6731_s17 + $0x58] sm:$0xf]  ;;  %p6562_p12 = pnand %p6561_p11, %p6695_p5  ;;  %p6568_p1 = scmp.lt.s32.totalorder %s6566_s16, %s6560_s22 }
  0x2e   : > { %5850 = vmatmul.mubr.msk.bf16.gmra.mrb[8].mxu1 %vm343_vm1, %v6500_v63  ;;  %v2264_v40 = vrot.slane %v2263_v30, 4  ;;  %v2292_v46 = vrot.slane %v2290_v33, 5  ;;  %v2259_v48 = vsel %vm6783_vm6, %v2254_v36, %v2258_v14  ;;  %v2295_v51 = vshrl.u32 %v5332_v34, 16  ;;  %6450 = vmatprep.subr.msk.bf16.mxu0 %vm392_vm0, %v6736_v6  ;;  %v6881_v36 = vld [vmem:[%s6731_s17 + $0x5c] sm:$0x1] }
  0x2f   : > { %5853 = vmatprep.mubr.msk.bf16.mxu1 %vm343_vm1, %v6501_v18  ;;  %v2298_v53 = vshll.u32 %v5332_v34, 16  ;;  %v2304_v49 = vshll.u32 %v6837_v38, 16  ;;  %v2278_v55 = vrot.slane %v2277_v43, 4  ;;  %v2287_v56 = vor.u32 %v2286_v44, %v2282_v37  ;;  %v6504_v34 = vld [vmem:[%s6731_s17 + $0x6c] sm:$0xff]   ;;  %p6563_p13 = pneg %p6562_p12  ;;  %p6569_p2 = por %p6568_p1, %p6567_p0 }
  0x30   : > { %v2269_v12 = vsel %vm6783_vm6, %v2264_v40, %v2268_v21  ;;  %v2308_v57 = vshrl.u32 %v6837_v38, 16  ;;  %v2297_v61 = vrot.slane %v2295_v51, 4  ;;  %v2314_v7 = vshll.u32 %v6845_v47, 16  ;;  %v5338_v21 = vld [vmem:[%s6731_s17 + $0x54] sm:$0xf] }
  0x31   : > { %v5371_v60 = vcombine.low %v2259_v48, %v2269_v12  ;;  %v2300_v62 = vrot.slane %v2298_v53, 5  ;;  %v2306_v63 = vrot.slane %v2304_v49, 5  ;;  %v2283_v6 = vsel %vm6783_vm6, %v2278_v55, %v2282_v37  ;;  %v6888_v48 = vld [vmem:[%s6731_s17 + $0x64] sm:$0xf]  ;;  %p6570_p3 = pnand %p6569_p2, %p6563_p13 }
  0x32   : > { %v2288_v4 = vrot.slane %v2287_v56, 4  ;;  %v2310_v5 = vrot.slane %v2308_v57, 4  ;;  %v2319_v10 = vshrl.u32 %v5335_v52, 16  ;;  %v2322_v11 = vshll.u32 %v5335_v52, 16  ;;  %v6505_v57 = vld [vmem:[%s6731_s17 + $0x78] sm:$0xff]  }
  0x33   : > { %5981 = vmatprep.mubr.msk.bf16.mxu0 %vm343_vm1, %v5371_v60  ;;  %v2301_v8 = vor.u32 %v2300_v62, %v2297_v61  ;;  %v2328_v14 = vshll.u32 %v6858_v59, 16  ;;  %v2316_v19 = vrot.slane %v2314_v7, 5  ;;  %v2332_v20 = vshrl.u32 %v6858_v59, 16 }
  0x34   : > { %v2293_v17 = vsel %vm6783_vm6, %v2288_v4, %v2292_v46  ;;  %v2311_v18 = vor.u32 %v2310_v5, %v2306_v63  ;;  %v2321_v27 = vrot.slane %v2319_v10, 4  ;;  %v2324_v28 = vrot.slane %v2322_v11, 5  ;;  %v5341_v46 = vld [vmem:[%s6731_s17 + $0x60] sm:$0xf]  ;;  %v6900_v4 = vld [vmem:[%s6731_s17 + $0x68] sm:$0x1] }
  0x35   : > { %v5372_v22 = vcombine.low %v2283_v6, %v2293_v17  ;;  %v2302_v25 = vrot.slane %v2301_v8, 4  ;;  %v2330_v31 = vrot.slane %v2328_v14, 5  ;;  %v2334_v32 = vrot.slane %v2332_v20, 4  ;;  %v5344_v17 = vld [vmem:[%s6731_s17 + $0x6c] sm:$0xf] }
  0x36   : > { %5854 = vmatmul.mubr.msk.bf16.gmra.mrb[12].mxu1 %vm343_vm1, %v6502_v50  ;;  %v2312_v30 = vrot.slane %v2311_v18, 4  ;;  %v2338_v33 = vshll.u32 %v6861_v0, 16  ;;  %v2325_v40 = vor.u32 %v2324_v28, %v2321_v27  ;;  %v2343_v43 = vshrl.u32 %v5338_v21, 16 }
  0x37   : > { %5857 = vmatprep.mubr.msk.bf16.mxu1 %vm343_vm1, %v6503_v1  ;;  %5982 = vmatmul.mubr.msk.bf16.gmra.mrb[4].mxu0 %vm343_vm1, %v5372_v22  ;;  %v2307_v37 = vsel %vm6783_vm6, %v2302_v25, %v2306_v63  ;;  %v2346_v44 = vshll.u32 %v5338_v21, 16  ;;  %v2335_v51 = vor.u32 %v2334_v32, %v2330_v31  ;;  %v2352_v49 = vshll.u32 %v6876_v29, 16  ;;  %v6909_v22 = vld [vmem:[%s6731_s17 + $0x70] sm:$0xf]  ;;  %v6915_v32 = vld [vmem:[%s6731_s17 + $0x74] sm:$0x1] }
  0x38   : > { %v2317_v50 = vsel %vm6783_vm6, %v2312_v30, %v2316_v19  ;;  %v2340_v53 = vrot.slane %v2338_v33, 5  ;;  %v2326_v12 = vrot.slane %v2325_v40, 4  ;;  %v2345_v55 = vrot.slane %v2343_v43, 4  ;;  %v5347_v43 = vld [vmem:[%s6731_s17 + $0x78] sm:$0xf] }
  0x39   : > { %v5373_v52 = vcombine.low %v2307_v37, %v2317_v50  ;;  %v2348_v56 = vrot.slane %v2346_v44, 5  ;;  %v2336_v60 = vrot.slane %v2335_v51, 4  ;;  %v2354_v61 = vrot.slane %v2352_v49, 5  ;;  %v6507_v44 = vld [vmem:[%s6731_s17 + $0x90] sm:$0xff]   ;;  %v6924_v49 = vld [vmem:[%s6731_s17 + $0x7c] sm:$0xf] }
  0x3a   : > { %v2356_v62 = vshrl.u32 %v6876_v29, 16  ;;  %v2362_v63 = vshll.u32 %v6881_v36, 16  ;;  %v2331_v1 = vsel %vm6783_vm6, %v2326_v12, %v2330_v31  ;;  %v2367_v5 = vshrl.u32 %v5341_v46, 16  ;;  %v6506_v31 = vld [vmem:[%s6731_s17 + $0x84] sm:$0xff]  }
  0x3b   : > { %5985 = vmatprep.mubr.msk.bf16.mxu0 %vm343_vm1, %v5373_v52  ;;  %v2349_v6 = vor.u32 %v2348_v56, %v2345_v55  ;;  %v2370_v7 = vshll.u32 %v5341_v46, 16  ;;  %v2341_v8 = vsel %vm6783_vm6, %v2336_v60, %v2340_v53  ;;  %v2376_v14 = vshll.u32 %v6888_v48, 16 }
  0x3c   : > { %v2358_v10 = vrot.slane %v2356_v62, 4  ;;  %v2364_v11 = vrot.slane %v2362_v63, 5  ;;  %v5374_v18 = vcombine.low %v2331_v1, %v2341_v8  ;;  %v2369_v20 = vrot.slane %v2367_v5, 4  ;;  %v6931_v63 = vld [vmem:[%s6731_s17 + $0x80] sm:$0x1] }
  0x3d   : > { %v2350_v19 = vrot.slane %v2349_v6, 4  ;;  %v2372_v21 = vrot.slane %v2370_v7, 5  ;;  %v2378_v27 = vrot.slane %v2376_v14, 5  ;;  %v2380_v28 = vshrl.u32 %v6888_v48, 16  ;;  %v5401_v8 = vld [vmem:[%s6731_s17 + $0xc] sm:$0xe] }
  0x3e   : > { %5858 = vmatmul.mubr.msk.bf16.gmra.mrb[16].mxu1 %vm343_vm1, %v6504_v34  ;;  %v2359_v25 = vor.u32 %v2358_v10, %v2354_v61  ;;  %v2386_v30 = vshll.u32 %v6900_v4, 16  ;;  %v2391_v37 = vshrl.u32 %v5344_v17, 16  ;;  %v2394_v40 = vshll.u32 %v5344_v17, 16 }
  0x3f   : > { %5861 = vmatprep.mubr.msk.bf16.mxu1 %vm343_vm1, %v6505_v57  ;;  %5986 = vmatmul.mubr.msk.bf16.gmra.mrb[8].mxu0 %vm343_vm1, %v5374_v18  ;;  %v2355_v33 = vsel %vm6783_vm6, %v2350_v19, %v2354_v61  ;;  %v2373_v34 = vor.u32 %v2372_v21, %v2369_v20  ;;  %v2382_v50 = vrot.slane %v2380_v28, 4  ;;  %v2400_v53 = vshll.u32 %v6909_v22, 16 }
  0x40   : > { %v2360_v46 = vrot.slane %v2359_v25, 4  ;;  %v2388_v51 = vrot.slane %v2386_v30, 5  ;;  %v2393_v12 = vrot.slane %v2391_v37, 4  ;;  %v2396_v55 = vrot.slane %v2394_v40, 5 }
  0x41   : > { %v2374_v52 = vrot.slane %v2373_v34, 4  ;;  %v2404_v56 = vshrl.u32 %v6909_v22, 16  ;;  %v2383_v60 = vor.u32 %v2382_v50, %v2378_v27  ;;  %v2402_v61 = vrot.slane %v2400_v53, 5 }
  0x42   : > { %v2365_v57 = vsel %vm6783_vm6, %v2360_v46, %v2364_v11  ;;  %v2410_v62 = vshll.u32 %v6915_v32, 16  ;;  %v2397_v5 = vor.u32 %v2396_v55, %v2393_v12  ;;  %v2415_v17 = vshrl.u32 %v5347_v43, 16  ;;  %v5402_v11 = vld [vmem:[%s6731_s17 + $0x18] sm:$0xe] }
  0x43   : > { %v5375_v1 = vcombine.low %v2355_v33, %v2365_v57  ;;  %v2379_v6 = vsel %vm6783_vm6, %v2374_v52, %v2378_v27  ;;  %v2406_v7 = vrot.slane %v2404_v56, 4  ;;  %v2384_v10 = vrot.slane %v2383_v60, 4  ;;  %v6509_v56 = vld [vmem:[%s6731_s17 + $0xa8] sm:$0xff]  }
  0x44   : > { %v2412_v14 = vrot.slane %v2410_v62, 5  ;;  %v2418_v18 = vshll.u32 %v5347_v43, 16  ;;  %v2398_v19 = vrot.slane %v2397_v5, 4  ;;  %v2424_v21 = vshll.u32 %v6924_v49, 16  ;;  %v5403_v43 = vld [vmem:[%s6731_s17 + $0x24] sm:$0xe] }
  0x45   : > { %5989 = vmatprep.mubr.msk.bf16.mxu0 %vm343_vm1, %v5375_v1  ;;  %v2407_v20 = vor.u32 %v2406_v7, %v2402_v61  ;;  %v2428_v25 = vshrl.u32 %v6924_v49, 16  ;;  %v2389_v27 = vsel %vm6783_vm6, %v2384_v10, %v2388_v51  ;;  %v2417_v28 = vrot.slane %v2415_v17, 4  ;;  %v589_v10 = vld [vmem:[%s6731_s17] sm:$0xf] }
  0x46   : > { %5862 = vmatmul.mubr.msk.bf16.gmra.mrb[20].mxu1 %vm343_vm1, %v6506_v31  ;;  %v2420_v30 = vrot.slane %v2418_v18, 5  ;;  %v2434_v31 = vshll.u32 %v6931_v63, 16  ;;  %v5376_v33 = vcombine.low %v2379_v6, %v2389_v27  ;;  %v2403_v34 = vsel %vm6783_vm6, %v2398_v19, %v2402_v61  ;;  %v5404_v6 = vld [vmem:[%s6731_s17 + $0x30] sm:$0xe]  ;;  %v591_v18 = vld [vmem:[%s6731_s17 + $0x8] sm:$0x1] }
  0x47   : > { %5865 = vmatprep.mubr.msk.bf16.mxu1 %vm343_vm1, %v6507_v44  ;;  %v2408_v37 = vrot.slane %v2407_v20, 4  ;;  %v2426_v40 = vrot.slane %v2424_v21, 5  ;;  %v2430_v50 = vrot.slane %v2428_v25, 4  ;;  %v6508_v44 = vld [vmem:[%s6731_s17 + $0x9c] sm:$0xff]   ;;  %v5417_v52 = vrot.slane %v5401_v8, 9 }
  0x48   : > { %v2421_v46 = vor.u32 %v2420_v30, %v2417_v28  ;;  %v2436_v53 = vrot.slane %v2434_v31, 5  ;;  %5990 = vmatmul.mubr.msk.bf16.gmra.mrb[12].mxu0 %vm343_vm1, %v5376_v33  ;;  %v2944_v12 = vrot.slane %v2942_v42, 4  ;;  %v5418_v55 = vrot.slane %v5402_v11, 9  ;;  %v592_v21 = vld [vmem:[%s6731_s17 + $0xc] sm:$0xf]  ;;  %v6510_v30 = vld [vmem:[%s6731_s17 + $0xb4] sm:$0xff]  }
  0x49   : > { %v2413_v51 = vsel %vm6783_vm6, %v2408_v37, %v2412_v14  ;;  %v5419_v57 = vrot.slane %v5403_v43, 9  ;;  %v2431_v62 = vor.u32 %v2430_v50, %v2426_v40  ;;  %v2943_v1 = vsel %vm6824_vm7, %v5417_v52, %v2942_v42  ;;  %v593_v37 = vld [vmem:[%s6731_s17 + $0x10] sm:$0xf]  ;;  %v594_v50 = vld [vmem:[%s6731_s17 + $0x14] sm:$0x1] }
  0x4a   : > { %v5377_v60 = vcombine.low %v2403_v34, %v2413_v51  ;;  %v2422_v61 = vrot.slane %v2421_v46, 4  ;;  %v2946_v5 = vsel %vm6824_vm7, %v2944_v12, %v2945_v35  ;;  %v6968_v7 = vsel %vm6824_vm7, %v5418_v55, %v2949_v45  ;;  %v590_v35 = vld [vmem:[%s6731_s17 + $0x4] sm:$0xf]  ;;  %v5405_v55 = vld [vmem:[%s6731_s17 + $0x3c] sm:$0xe] }
  0x4b   : > { %v2956_v8 = vrot.slane %v6796_v54, 5  ;;  %v2959_v15 = vrot.slane %v6803_v58, 5  ;;  %v2432_v42 = vrot.slane %v2431_v62, 4  ;;  %v5434_v24 = vcombine.low %v2943_v1, %v2946_v5 }
  0x4c   : > { %5993 = vmatprep.mubr.msk.bf16.mxu0 %vm343_vm1, %v5377_v60  ;;  %v2427_v16 = vsel %vm6783_vm6, %v2422_v61, %v2426_v40  ;;  %v5435_v45 = vcombine.low %v6968_v7, %v6841_v39  ;;  %v5420_v14 = vrot.slane %v5404_v6, 9  ;;  %v2963_v17 = vrot.slane %v6809_v2, 5 }
  0x4d   : > { %v6983_v54 = vsel %vm6824_vm7, %v5419_v57, %v2956_v8  ;;  %v2958_v58 = vrot.slane %v2956_v8, 4  ;;  %v2437_v11 = vsel %vm6783_vm6, %v2432_v42, %v2436_v53  ;;  %v2966_v19 = vrot.slane %v6814_v9, 5 }
  0x4e   : > { %5866 = vmatmul.mubr.msk.bf16.gmra.mrb[24].mxu1 %vm343_vm1, %v6508_v44  ;;  %v641_v39 = vshrl.u32 %v589_v10, 16  ;;  %v644_v20 = vshll.u32 %v589_v10, 16  ;;  %v5378_v25 = vcombine.low %v2427_v16, %v2437_v11  ;;  %v6995_v28 = vsel %vm6824_vm7, %v5420_v14, %v2963_v17  ;;  %v5406_v16 = vld [vmem:[%s6731_s17 + $0x48] sm:$0xe] }
  0x4f   : > { %5869 = vmatprep.mubr.msk.bf16.mxu1 %vm343_vm1, %v6509_v56  ;;  %v2960_v27 = vsel %vm6824_vm7, %v2958_v58, %v2959_v15  ;;  %v2965_v2 = vrot.slane %v2963_v17, 4  ;;  %v650_v9 = vshll.u32 %v590_v35, 16  ;;  %v654_v43 = vshrl.u32 %v590_v35, 16  ;;  %v595_v58 = vld [vmem:[%s6731_s17 + $0x18] sm:$0xf] }
  0x50   : > { %v5436_v31 = vcombine.low %v6983_v54, %v2960_v27  ;;  %v643_v33 = vrot.slane %v641_v39, 4  ;;  %v646_v34 = vrot.slane %v644_v20, 5  ;;  %5994 = vmatmul.mubr.msk.bf16.gmra.mrb[16].mxu0 %vm343_vm1, %v5378_v25  ;;  %v660_v46 = vshll.u32 %v591_v18, 16 }
  0x51   : > { %v7003_v40 = vsel %vm6824_vm7, %v2965_v2, %v2966_v19  ;;  %v665_v53 = vshrl.u32 %v592_v21, 16  ;;  %6011 = vmatprep.mubr.msk.bf16.mxu0 %vm343_vm1, %v5434_v24  ;;  %v652_v51 = vrot.slane %v650_v9, 5  ;;  %v668_v12 = vshll.u32 %v592_v21, 16  ;;  %v7027_v2 = vld [vmem:[%s6731_s17 + $0x1c] sm:$0xf] }
  0x52   : > { %v5437_v44 = vcombine.low %v6995_v28, %v7003_v40  ;;  %v647_v52 = vor.u32 %v646_v34, %v643_v33  ;;  %v656_v56 = vrot.slane %v654_v43, 4  ;;  %v662_v57 = vrot.slane %v660_v46, 5  ;;  %v598_v9 = vld [vmem:[%s6731_s17 + $0x24] sm:$0xf] }
  0x53   : > { %v667_v60 = vrot.slane %v665_v53, 4  ;;  %v674_v61 = vshll.u32 %v593_v37, 16  ;;  %v670_v1 = vrot.slane %v668_v12, 5  ;;  %v678_v6 = vshrl.u32 %v593_v37, 16 }
  0x54   : > { %v648_v62 = vrot.slane %v647_v52, 4  ;;  %v684_v5 = vshll.u32 %v594_v50, 16  ;;  %v657_v7 = vor.u32 %v656_v56, %v652_v51  ;;  %v5421_v15 = vrot.slane %v5405_v55, 9  ;;  %v7048_v52 = vld [vmem:[%s6731_s17 + $0x28] sm:$0xf] }
  0x55   : > { %v676_v8 = vrot.slane %v674_v61, 5  ;;  %v2970_v10 = vrot.slane %v6837_v38, 5  ;;  %v671_v24 = vor.u32 %v670_v1, %v667_v60  ;;  %v680_v35 = vrot.slane %v678_v6, 4  ;;  %v7053_v56 = vld [vmem:[%s6731_s17 + $0x2c] sm:$0x1] }
  0x56   : > { %5870 = vmatmul.mubr.msk.bf16.gmra.mrb[28].mxu1 %vm343_vm1, %v6510_v30  ;;  %v653_v42 = vsel %vm6783_vm6, %v648_v62, %v652_v51  ;;  %v686_v54 = vrot.slane %v684_v5, 5  ;;  %v658_v14 = vrot.slane %v657_v7, 4  ;;  %v2973_v11 = vrot.slane %v6845_v47, 5  ;;  %v7030_v30 = vld [vmem:[%s6731_s17 + $0x20] sm:$0x1] }
  0x57   : > { %v2971_v17 = vsel %vm6824_vm7, %v5421_v15, %v2970_v10  ;;  %v2972_v18 = vrot.slane %v2970_v10, 4  ;;  %v672_v19 = vrot.slane %v671_v24, 4  ;;  %v681_v39 = vor.u32 %v680_v35, %v676_v8  ;;  %v5407_v60 = vld [vmem:[%s6731_s17 + $0x54] sm:$0xe] }
  0x58   : > { %v5422_v38 = vrot.slane %v5406_v16, 9  ;;  %v2977_v20 = vrot.slane %v6858_v59, 5  ;;  %6012 = vmatmul.mubr.msk.bf16.vlgmr.msra.gmra.mrb[0].mxu0 %vm343_vm1, %v5435_v45  ;;  %v663_v21 = vsel %vm6783_vm6, %v658_v14, %v662_v57  ;;  %v2980_v27 = vrot.slane %v6861_v0, 5 }
  0x59   : > { %v2974_v25 = vsel %vm6824_vm7, %v2972_v18, %v2973_v11  ;;  %v689_v47 = vshrl.u32 %v595_v58, 16  ;;  %6044 = vmatpush3.bf16.msra.mxu0 %v6752_v13  ;;  %6015 = vmatprep.mubr.msk.bf16.mxu0 %vm343_vm1, %v5436_v31  ;;  %v5174_v59 = vcombine.low %v653_v42, %v663_v21  ;;  %v677_v45 = vsel %vm6783_vm6, %v672_v19, %v676_v8 }
  0x5a   : > { %v682_v33 = vrot.slane %v681_v39, 4  ;;  %v5438_v34 = vcombine.low %v2971_v17, %v2974_v25  ;;  %v7039_v0 = vsel %vm6824_vm7, %v5422_v38, %v2977_v20  ;;  %v2979_v37 = vrot.slane %v2977_v20, 4  ;;  %v5408_v17 = vld [vmem:[%s6731_s17 + $0x60] sm:$0xe]  ;;  %v601_v25 = vld [vmem:[%s6731_s17 + $0x30] sm:$0xf] }
  0x5b   : > { %v691_v43 = vrot.slane %v689_v47, 4  ;;  %v692_v46 = vshll.u32 %v595_v58, 16  ;;  %5875 = vmatprep.mubr.msk.bf16.mxu1 %vm343_vm1, %v5174_v59  ;;  %v698_v31 = vshll.u32 %v7027_v2, 16  ;;  %v702_v50 = vshrl.u32 %v7027_v2, 16 }
  0x5c   : > { %v687_v13 = vsel %vm6783_vm6, %v682_v33, %v686_v54  ;;  %v708_v53 = vshll.u32 %v7030_v30, 16  ;;  %v2981_v12 = vsel %vm6824_vm7, %v2979_v37, %v2980_v27  ;;  %v713_v57 = vshrl.u32 %v598_v9, 16  ;;  %v7079_v27 = vld [vmem:[%s6731_s17 + $0x34] sm:$0xf]  ;;  %v7085_v33 = vld [vmem:[%s6731_s17 + $0x38] sm:$0x1] }
  0x5d   : > { %v5175_v51 = vcombine.low %v677_v45, %v687_v13  ;;  %v694_v55 = vrot.slane %v692_v46, 5  ;;  %v5439_v61 = vcombine.low %v7039_v0, %v2981_v12  ;;  %v700_v62 = vrot.slane %v698_v31, 5  ;;  %v604_v13 = vld [vmem:[%s6731_s17 + $0x3c] sm:$0xf]  ;;  %v7101_v12 = vld [vmem:[%s6731_s17 + $0x40] sm:$0xf] }
  0x5e   : > { %v704_v1 = vrot.slane %v702_v50, 4  ;;  %v710_v6 = vrot.slane %v708_v53, 5  ;;  %v715_v7 = vrot.slane %v713_v57, 4  ;;  %v716_v8 = vshll.u32 %v598_v9, 16 }
  0x5f   : > { %5876 = vmatmul.mubr.msk.bf16.vlgmr.msra.gmra.mrb[0].mxu1 %vm343_vm1, %v5175_v51  ;;  %v695_v5 = vor.u32 %v694_v55, %v691_v43  ;;  %v722_v15 = vshll.u32 %v7048_v52, 16  ;;  %v726_v16 = vshrl.u32 %v7048_v52, 16  ;;  %v732_v42 = vshll.u32 %v7053_v56, 16 }
  0x60   : > { %v705_v10 = vor.u32 %v704_v1, %v700_v62  ;;  %v5423_v24 = vrot.slane %v5407_v60, 9  ;;  %5908 = vmatpush3.bf16.msra.mxu1 %v6772_v26  ;;  %6016 = vmatmul.mubr.msk.bf16.gmra.mrb[4].mxu0 %vm343_vm1, %v5437_v44  ;;  %v718_v54 = vrot.slane %v716_v8, 5  ;;  %v2984_v14 = vrot.slane %v6876_v29, 5  ;;  %v7105_v1 = vld [vmem:[%s6731_s17 + $0x44] sm:$0x1] }
  0x61   : > { %v696_v35 = vrot.slane %v695_v5, 4  ;;  %v724_v58 = vrot.slane %v722_v15, 5  ;;  %6019 = vmatprep.mubr.msk.bf16.mxu0 %vm343_vm1, %v5438_v34  ;;  %v728_v11 = vrot.slane %v726_v16, 4  ;;  %v734_v19 = vrot.slane %v732_v42, 5 }
  0x62   : > { %v706_v18 = vrot.slane %v705_v10, 4  ;;  %v2987_v26 = vrot.slane %v6881_v36, 5  ;;  %v719_v40 = vor.u32 %v718_v54, %v715_v7  ;;  %v2985_v44 = vsel %vm6824_vm7, %v5423_v24, %v2984_v14 }
  0x63   : > { %v701_v28 = vsel %vm6783_vm6, %v696_v35, %v700_v62  ;;  %v2986_v39 = vrot.slane %v2984_v14, 4  ;;  %v729_v38 = vor.u32 %v728_v11, %v724_v58  ;;  %v5424_v20 = vrot.slane %v5408_v17, 9  ;;  %v5410_v14 = vld [vmem:[%s6731_s17 + $0x78] sm:$0xe] }
  0x64   : > { %v711_v29 = vsel %vm6783_vm6, %v706_v18, %v710_v6  ;;  %v2991_v21 = vrot.slane %v6888_v48, 5  ;;  %v720_v47 = vrot.slane %v719_v40, 4  ;;  %v2994_v45 = vrot.slane %v6900_v4, 5  ;;  %v5409_v6 = vld [vmem:[%s6731_s17 + $0x6c] sm:$0xe] }
  0x65   : > { %v5176_v36 = vcombine.low %v701_v28, %v711_v29  ;;  %v2988_v59 = vsel %vm6824_vm7, %v2986_v39, %v2987_v26  ;;  %v730_v34 = vrot.slane %v729_v38, 4  ;;  %v737_v43 = vshrl.u32 %v601_v25, 16 }
  0x66   : > { %v5440_v9 = vcombine.low %v2985_v44, %v2988_v59  ;;  %v2992_v0 = vsel %vm6824_vm7, %v5424_v20, %v2991_v21  ;;  %v2993_v48 = vrot.slane %v2991_v21, 4  ;;  %v725_v37 = vsel %vm6783_vm6, %v720_v47, %v724_v58  ;;  %v607_v21 = vld [vmem:[%s6731_s17 + $0x48] sm:$0xf] }
  0x67   : > { %5879 = vmatprep.mubr.msk.bf16.mxu1 %vm343_vm1, %v5176_v36  ;;  %v740_v46 = vshll.u32 %v601_v25, 16  ;;  %v746_v4 = vshll.u32 %v7079_v27, 16  ;;  %v735_v31 = vsel %vm6783_vm6, %v730_v34, %v734_v19  ;;  %v750_v53 = vshrl.u32 %v7079_v27, 16 }
  0x68   : > { %v2995_v50 = vsel %vm6824_vm7, %v2993_v48, %v2994_v45  ;;  %v756_v51 = vshll.u32 %v7085_v33, 16  ;;  %6020 = vmatmul.mubr.msk.bf16.gmra.mrb[8].mxu0 %vm343_vm1, %v5439_v61  ;;  %v5177_v55 = vcombine.low %v725_v37, %v735_v31  ;;  %v739_v60 = vrot.slane %v737_v43, 4  ;;  %v610_v31 = vld [vmem:[%s6731_s17 + $0x54] sm:$0xf] }
  0x69   : > { %v5441_v57 = vcombine.low %v2992_v0, %v2995_v50  ;;  %v742_v62 = vrot.slane %v740_v46, 5  ;;  %6023 = vmatprep.mubr.msk.bf16.mxu0 %vm343_vm1, %v5440_v9  ;;  %v748_v5 = vrot.slane %v746_v4, 5  ;;  %v752_v7 = vrot.slane %v750_v53, 4  ;;  %v7127_v9 = vld [vmem:[%s6731_s17 + $0x4c] sm:$0xf] }
  0x6a   : > { %v758_v8 = vrot.slane %v756_v51, 5  ;;  %v761_v15 = vshrl.u32 %v604_v13, 16  ;;  %5880 = vmatmul.mubr.msk.bf16.gmra.mrb[4].mxu1 %vm343_vm1, %v5177_v55  ;;  %v764_v16 = vshll.u32 %v604_v13, 16  ;;  %v770_v61 = vshll.u32 %v7101_v12, 16  ;;  %v7143_v50 = vld [vmem:[%s6731_s17 + $0x58] sm:$0xf] }
  0x6b   : > { %v743_v10 = vor.u32 %v742_v62, %v739_v60  ;;  %v774_v42 = vshrl.u32 %v7101_v12, 16  ;;  %v753_v24 = vor.u32 %v752_v7, %v748_v5  ;;  %v780_v54 = vshll.u32 %v7105_v1, 16  ;;  %v7149_v60 = vld [vmem:[%s6731_s17 + $0x5c] sm:$0x1] }
  0x6c   : > { %v763_v35 = vrot.slane %v761_v15, 4  ;;  %v5425_v58 = vrot.slane %v5409_v6, 9  ;;  %v766_v18 = vrot.slane %v764_v16, 5  ;;  %v772_v11 = vrot.slane %v770_v61, 5  ;;  %v5352_v15 = vld [vmem:[%s6731_s17 + $0x8c] sm:$0x1] }
  0x6d   : > { %v744_v17 = vrot.slane %v743_v10, 4  ;;  %v776_v19 = vrot.slane %v774_v42, 4  ;;  %v754_v26 = vrot.slane %v753_v24, 4  ;;  %v782_v28 = vrot.slane %v780_v54, 5  ;;  %v5411_v10 = vld [vmem:[%s6731_s17 + $0x84] sm:$0xe] }
  0x6e   : > { %v2998_v40 = vrot.slane %v6909_v22, 5  ;;  %v3001_v44 = vrot.slane %v6915_v32, 5  ;;  %v767_v29 = vor.u32 %v766_v18, %v763_v35  ;;  %v5426_v20 = vrot.slane %v5410_v14, 9 }
  0x6f   : > { %v749_v39 = vsel %vm6783_vm6, %v744_v17, %v748_v5  ;;  %v777_v38 = vor.u32 %v776_v19, %v772_v11  ;;  %v759_v25 = vsel %vm6783_vm6, %v754_v26, %v758_v8  ;;  %v3005_v22 = vrot.slane %v6924_v49, 5  ;;  %v7134_v49 = vld [vmem:[%s6731_s17 + $0x50] sm:$0x1]  ;;  %v5351_v8 = vld [vmem:[%s6731_s17 + $0x88] sm:$0xf] }
  0x70   : > { %v2999_v36 = vsel %vm6824_vm7, %v5425_v58, %v2998_v40  ;;  %v3000_v47 = vrot.slane %v2998_v40, 4  ;;  %6024 = vmatmul.mubr.msk.bf16.gmra.mrb[12].mxu0 %vm343_vm1, %v5441_v57  ;;  %v5178_v32 = vcombine.low %v749_v39, %v759_v25  ;;  %v768_v59 = vrot.slane %v767_v29, 4  ;;  %v7162_v26 = vld [vmem:[%s6731_s17 + $0x94] sm:$0xf] }
  0x71   : > { %v778_v45 = vrot.slane %v777_v38, 4  ;;  %v3008_v34 = vrot.slane %v6931_v63, 5  ;;  %v3006_v48 = vsel %vm6824_vm7, %v5426_v20, %v3005_v22  ;;  %v3007_v37 = vrot.slane %v3005_v22, 4 }
  0x72   : > { %v3002_v0 = vsel %vm6824_vm7, %v3000_v47, %v3001_v44  ;;  %v785_v43 = vshrl.u32 %v607_v21, 16  ;;  %5883 = vmatprep.mubr.msk.bf16.mxu1 %vm343_vm1, %v5178_v32  ;;  %v773_v46 = vsel %vm6783_vm6, %v768_v59, %v772_v11  ;;  %v788_v13 = vshll.u32 %v607_v21, 16 }
  0x73   : > { %v783_v63 = vsel %vm6783_vm6, %v778_v45, %v782_v28  ;;  %v5442_v4 = vcombine.low %v2999_v36, %v3002_v0  ;;  %v3009_v51 = vsel %vm6824_vm7, %v3007_v37, %v3008_v34  ;;  %v794_v57 = vshll.u32 %v7127_v9, 16  ;;  %v7167_v28 = vld [vmem:[%s8486_s1 + $0xe] sm:$0x3]  ;;  %v5412_v0 = vld [vmem:[%s6731_s17 + $0x90] sm:$0xe] }
  0x74   : > { %v5179_v53 = vcombine.low %v773_v46, %v783_v63  ;;  %v787_v55 = vrot.slane %v785_v43, 4  ;;  %v5443_v62 = vcombine.low %v3006_v48, %v3009_v51  ;;  %v790_v6 = vrot.slane %v788_v13, 5  ;;  %6451 = vmatprep.subr.msk.bf16.mxu0 %vm392_vm0, %v7167_v28  ;;  %v7181_v43 = vld [vmem:[%s6731_s17 + $0x98] sm:$0x1]  ;;  %v613_v46 = vld [vmem:[%s6731_s17 + $0x60] sm:$0xf] }
  0x75   : > { %6027 = vmatprep.mubr.msk.bf16.mxu0 %vm343_vm1, %v5442_v4  ;;  %v798_v5 = vshrl.u32 %v7127_v9, 16  ;;  %v804_v7 = vshll.u32 %v7134_v49, 16  ;;  %v796_v16 = vrot.slane %v794_v57, 5  ;;  %v809_v61 = vshrl.u32 %v610_v31, 16  ;;  %v7193_v51 = vld [vmem:[%s6731_s17 + $0x68] sm:$0x1] }
  0x76   : > { %5884 = vmatmul.mubr.msk.bf16.gmra.mrb[8].mxu1 %vm343_vm1, %v5179_v53  ;;  %v812_v42 = vshll.u32 %v610_v31, 16  ;;  %v818_v24 = vshll.u32 %v7143_v50, 16  ;;  %v791_v35 = vor.u32 %v790_v6, %v787_v55  ;;  %v822_v14 = vshrl.u32 %v7143_v50, 16  ;;  %v7190_v53 = vld [vmem:[%s6731_s17 + $0x64] sm:$0xf] }
  0x77   : > { %v800_v54 = vrot.slane %v798_v5, 4  ;;  %v806_v58 = vrot.slane %v804_v7, 5  ;;  %v811_v17 = vrot.slane %v809_v61, 4  ;;  %v828_v19 = vshll.u32 %v7149_v60, 16  ;;  %v616_v5 = vld [vmem:[%s6731_s17 + $0x6c] sm:$0xf] }
  0x78   : > { %v814_v18 = vrot.slane %v812_v42, 5  ;;  %v820_v11 = vrot.slane %v818_v24, 5  ;;  %6028 = vmatmul.mubr.msk.bf16.gmra.mrb[16].mxu0 %vm343_vm1, %v5443_v62  ;;  %v792_v40 = vrot.slane %v791_v35, 4  ;;  %v824_v39 = vrot.slane %v822_v14, 4  ;;  %v7210_v35 = vld [vmem:[%s6731_s17 + $0x74] sm:$0x1] }
  0x79   : > { %v801_v44 = vor.u32 %v800_v54, %v796_v16  ;;  %v5427_v29 = vrot.slane %v5411_v10, 9  ;;  %v830_v20 = vrot.slane %v828_v19, 5  ;;  %v3012_v21 = vrot.slane %v5351_v8, 5  ;;  %v7204_v10 = vld [vmem:[%s6731_s17 + $0x70] sm:$0xf] }
  0x7a   : > { %v815_v38 = vor.u32 %v814_v18, %v811_v17  ;;  %v3015_v25 = vrot.slane %v5352_v15, 5  ;;  %v797_v36 = vsel %vm6783_vm6, %v792_v40, %v796_v16  ;;  %v825_v22 = vor.u32 %v824_v39, %v820_v11  ;;  %v5413_v18 = vld [vmem:[%s6731_s17 + $0x9c] sm:$0xe]  ;;  %v5357_v39 = vld [vmem:[%s6731_s17 + $0xa0] sm:$0xf] }
  0x7b   : > { %v802_v47 = vrot.slane %v801_v44, 4  ;;  %v2472_v32 = vshll.u32 %v7162_v26, 16  ;;  %v3013_v45 = vsel %vm6824_vm7, %v5427_v29, %v3012_v21  ;;  %v3014_v34 = vrot.slane %v3012_v21, 4  ;;  %v1321_v54 = vld [vmem:[%s6731_s17 + $0x24] sm:$0xe] }
  0x7c   : > { %v816_v59 = vrot.slane %v815_v38, 4  ;;  %v826_v37 = vrot.slane %v825_v22, 4  ;;  %v2476_v31 = vshrl.u32 %v7162_v26, 16  ;;  %v5428_v6 = vrot.slane %v5412_v0, 9 }
  0x7d   : > { %v807_v48 = vsel %vm6783_vm6, %v802_v47, %v806_v58  ;;  %v3016_v13 = vsel %vm6824_vm7, %v3014_v34, %v3015_v25  ;;  %v7197_v62 = vrot.slane %v2472_v32, 5  ;;  %v3019_v8 = vrot.slane %v7162_v26, 5  ;;  %v5358_v25 = vld [vmem:[%s6731_s17 + $0xa4] sm:$0x1] }
  0x7e   : > { %v5180_v63 = vcombine.low %v797_v36, %v807_v48  ;;  %v821_v4 = vsel %vm6783_vm6, %v816_v59, %v820_v11  ;;  %v831_v55 = vsel %vm6783_vm6, %v826_v37, %v830_v20  ;;  %v5444_v57 = vcombine.low %v3013_v45, %v3016_v13  ;;  %v5414_v36 = vld [vmem:[%s6731_s17 + $0xa8] sm:$0xe]  ;;  %v5360_v37 = vld [vmem:[%s6731_s17 + $0xac] sm:$0xf] }
  0x7f   : > { %v5181_v7 = vcombine.low %v821_v4, %v831_v55  ;;  %v3022_v15 = vrot.slane %v7181_v43, 5  ;;  %v833_v16 = vshrl.u32 %v613_v46, 16  ;;  %v836_v61 = vshll.u32 %v613_v46, 16  ;;  %v5361_v46 = vld [vmem:[%s6731_s17 + $0xb0] sm:$0x1] }
  0x80   : > { %5887 = vmatprep.mubr.msk.bf16.mxu1 %vm343_vm1, %v5180_v63  ;;  %6031 = vmatprep.mubr.msk.bf16.mxu0 %vm343_vm1, %v5444_v57  ;;  %v842_v42 = vshll.u32 %v7190_v53, 16  ;;  %v846_v24 = vshrl.u32 %v7190_v53, 16  ;;  %v3020_v58 = vsel %vm6824_vm7, %v5428_v6, %v3019_v8  ;;  %v3021_v14 = vrot.slane %v3019_v8, 4  ;;  %v619_v63 = vld [vmem:[%s6731_s17 + $0x78] sm:$0xf] }
  0x81   : > { %5888 = vmatmul.mubr.msk.bf16.gmra.mrb[12].mxu1 %vm343_vm1, %v5181_v7  ;;  %v852_v17 = vshll.u32 %v7193_v51, 16  ;;  %v835_v11 = vrot.slane %v833_v16, 4  ;;  %v838_v19 = vrot.slane %v836_v61, 5  ;;  %v857_v20 = vshrl.u32 %v616_v5, 16  ;;  %v7231_v6 = vld [vmem:[%s6731_s17 + $0x7c] sm:$0xf] }
  0x82   : > { %v844_v40 = vrot.slane %v842_v42, 5  ;;  %v848_v44 = vrot.slane %v846_v24, 4  ;;  %v3023_v29 = vsel %vm6824_vm7, %v3021_v14, %v3022_v15  ;;  %v860_v21 = vshll.u32 %v616_v5, 16 }
  0x83   : > { %v854_v38 = vrot.slane %v852_v17, 5  ;;  %v5445_v47 = vcombine.low %v3020_v58, %v3023_v29  ;;  %v839_v22 = vor.u32 %v838_v19, %v835_v11  ;;  %v866_v59 = vshll.u32 %v7204_v10, 16  ;;  %v7240_v11 = vld [vmem:[%s6731_s17 + $0x80] sm:$0x1] }
  0x84   : > { %v849_v32 = vor.u32 %v848_v44, %v844_v40  ;;  %v859_v45 = vrot.slane %v857_v20, 4  ;;  %v862_v34 = vrot.slane %v860_v21, 5  ;;  %v870_v0 = vshrl.u32 %v7204_v10, 16 }
  0x85   : > { %v876_v48 = vshll.u32 %v7210_v35, 16  ;;  %6032 = vmatmul.mubr.msk.bf16.gmra.mrb[20].mxu0 %vm343_vm1, %v5445_v47  ;;  %v840_v4 = vrot.slane %v839_v22, 4  ;;  %v868_v55 = vrot.slane %v866_v59, 5  ;;  %v5429_v57 = vrot.slane %v5413_v18, 9 }
  0x86   : > { %v850_v13 = vrot.slane %v849_v32, 4  ;;  %v863_v5 = vor.u32 %v862_v34, %v859_v45  ;;  %v872_v7 = vrot.slane %v870_v0, 4  ;;  %v3026_v15 = vrot.slane %v5357_v39, 5  ;;  %v7255_v45 = vld [vmem:[%s6731_s17 + $0x8c] sm:$0x1] }
  0x87   : > { %v878_v8 = vrot.slane %v876_v48, 5  ;;  %v845_v16 = vsel %vm6783_vm6, %v840_v4, %v844_v40  ;;  %v3029_v42 = vrot.slane %v5358_v25, 5  ;;  %v5430_v24 = vrot.slane %v5414_v36, 9  ;;  %v622_v40 = vld [vmem:[%s6731_s17 + $0x84] sm:$0xf] }
  0x88   : > { %v855_v61 = vsel %vm6783_vm6, %v850_v13, %v854_v38  ;;  %v864_v14 = vrot.slane %v863_v5, 4  ;;  %v873_v17 = vor.u32 %v872_v7, %v868_v55  ;;  %v3027_v18 = vsel %vm6824_vm7, %v5429_v57, %v3026_v15  ;;  %v7248_v36 = vld [vmem:[%s6731_s17 + $0x88] sm:$0xf]  ;;  %v5363_v57 = vld [vmem:[%s6731_s17 + $0xb8] sm:$0xf] }
  0x89   : > { %v5182_v58 = vcombine.low %v845_v16, %v855_v61  ;;  %v3028_v19 = vrot.slane %v3026_v15, 4  ;;  %v3033_v44 = vrot.slane %v5360_v37, 5  ;;  %v3036_v39 = vrot.slane %v5361_v46, 5  ;;  %v7262_v46 = vld [vmem:[%s8486_s1 + $0x6] sm:$0x3] }
  0x8a   : > { %v881_v29 = vshrl.u32 %v619_v63, 16  ;;  %v869_v38 = vsel %vm6783_vm6, %v864_v14, %v868_v55  ;;  %v874_v20 = vrot.slane %v873_v17, 4  ;;  %v884_v21 = vshll.u32 %v619_v63, 16  ;;  %v5415_v5 = vld [vmem:[%s6731_s17 + $0xb4] sm:$0xe]  ;;  %6446 = vmatprep.subr.msk.bf16.mxu1 %vm392_vm0, %v7262_v46 }
  0x8b   : > { %5891 = vmatprep.mubr.msk.bf16.mxu1 %vm343_vm1, %v5182_v58  ;;  %v890_v25 = vshll.u32 %v7231_v6, 16  ;;  %v3030_v47 = vsel %vm6824_vm7, %v3028_v19, %v3029_v42  ;;  %v3034_v22 = vsel %vm6824_vm7, %v5430_v24, %v3033_v44  ;;  %v3035_v32 = vrot.slane %v3033_v44, 4  ;;  %v5364_v61 = vld [vmem:[%s6731_s17 + $0xbc] sm:$0x1]  ;;  %v5416_v42 = vld [vmem:[%s6731_s17 + $0xc0] sm:$0xe] }
  0x8c   : > { %v883_v59 = vrot.slane %v881_v29, 4  ;;  %v879_v34 = vsel %vm6783_vm6, %v874_v20, %v878_v8  ;;  %v5446_v0 = vcombine.low %v3027_v18, %v3030_v47  ;;  %v886_v48 = vrot.slane %v884_v21, 5  ;;  %v5366_v18 = vld [vmem:[%s6731_s17 + $0xc4] sm:$0xf] }
  0x8d   : > { %v892_v37 = vrot.slane %v890_v25, 5  ;;  %v5183_v63 = vcombine.low %v869_v38, %v879_v34  ;;  %v3037_v4 = vsel %vm6824_vm7, %v3035_v32, %v3036_v39  ;;  %v894_v13 = vshrl.u32 %v7231_v6, 16  ;;  %v5367_v25 = vld [vmem:[%s6731_s17 + $0xc8] sm:$0x1]  ;;  %v625_v34 = vld [vmem:[%s6731_s17 + $0x90] sm:$0xf] }
  0x8e   : > { %v900_v55 = vshll.u32 %v7240_v11, 16  ;;  %6035 = vmatprep.mubr.msk.bf16.mxu0 %vm343_vm1, %v5446_v0  ;;  %v5447_v7 = vcombine.low %v3034_v22, %v3037_v4  ;;  %v887_v8 = vor.u32 %v886_v48, %v883_v59  ;;  %v905_v15 = vshrl.u32 %v622_v40, 16 }
  0x8f   : > { %v908_v16 = vshll.u32 %v622_v40, 16  ;;  %5892 = vmatmul.mubr.msk.bf16.gmra.mrb[16].mxu1 %vm343_vm1, %v5183_v63  ;;  %v896_v24 = vrot.slane %v894_v13, 4  ;;  %v914_v14 = vshll.u32 %v7248_v36, 16  ;;  %v918_v17 = vshrl.u32 %v7248_v36, 16  ;;  %v7286_v13 = vld [vmem:[%s6731_s17 + $0x94] sm:$0xf] }
  0x90   : > { %v902_v58 = vrot.slane %v900_v55, 5  ;;  %6036 = vmatmul.mubr.msk.bf16.gmra.mrb[24].mxu0 %vm343_vm1, %v5447_v7  ;;  %v888_v19 = vrot.slane %v887_v8, 4  ;;  %v907_v44 = vrot.slane %v905_v15, 4  ;;  %v924_v29 = vshll.u32 %v7255_v45, 16  ;;  %v7291_v15 = vld [vmem:[%s6731_s17 + $0x98] sm:$0x1] }
  0x91   : > { %v910_v39 = vrot.slane %v908_v16, 5  ;;  %v897_v40 = vor.u32 %v896_v24, %v892_v37  ;;  %v916_v38 = vrot.slane %v914_v14, 5  ;;  %v920_v20 = vrot.slane %v918_v17, 4 }
  0x92   : > { %v5431_v21 = vrot.slane %v5415_v5, 9  ;;  %v893_v47 = vsel %vm6783_vm6, %v888_v19, %v892_v37  ;;  %v926_v32 = vrot.slane %v924_v29, 5  ;;  %v3040_v59 = vrot.slane %v5363_v57, 5  ;;  %v7303_v19 = vld [vmem:[%s6731_s17 + $0xa0] sm:$0xf] }
  0x93   : > { %v911_v22 = vor.u32 %v910_v39, %v907_v44  ;;  %v898_v0 = vrot.slane %v897_v40, 4  ;;  %v921_v48 = vor.u32 %v920_v20, %v916_v38  ;;  %v3043_v63 = vrot.slane %v5364_v61, 5 }
  0x94   : > { %v5432_v4 = vrot.slane %v5416_v42, 9  ;;  %v3041_v5 = vsel %vm6824_vm7, %v5431_v21, %v3040_v59  ;;  %v3042_v7 = vrot.slane %v3040_v59, 4  ;;  %v3047_v8 = vrot.slane %v5366_v18, 5  ;;  %v628_v18 = vld [vmem:[%s6731_s17 + $0x9c] sm:$0xf] }
  0x95   : > { %v912_v55 = vrot.slane %v911_v22, 4  ;;  %v903_v37 = vsel %vm6783_vm6, %v898_v0, %v902_v58  ;;  %v922_v57 = vrot.slane %v921_v48, 4  ;;  %v3050_v16 = vrot.slane %v5367_v25, 5  ;;  %v7315_v22 = vld [vmem:[%s6731_s17 + $0xa4] sm:$0x1]  ;;  %v6511_v0 = vld [vmem:[%s6731_s17 + $0x18] sm:$0xff]  }
  0x96   : > { %v929_v24 = vshrl.u32 %v625_v34, 16  ;;  %v5184_v61 = vcombine.low %v893_v47, %v903_v37  ;;  %v3044_v14 = vsel %vm6824_vm7, %v3042_v7, %v3043_v63  ;;  %v3048_v17 = vsel %vm6824_vm7, %v5432_v4, %v3047_v8 }
  0x97   : > { %v917_v42 = vsel %vm6783_vm6, %v912_v55, %v916_v38  ;;  %v927_v58 = vsel %vm6783_vm6, %v922_v57, %v926_v32  ;;  %v5448_v44 = vcombine.low %v3041_v5, %v3044_v14  ;;  %v3049_v39 = vrot.slane %v3047_v8, 4  ;;  %v631_v55 = vld [vmem:[%s6731_s17 + $0xa8] sm:$0xf] }
  0x98   : > { %v931_v29 = vrot.slane %v929_v24, 4  ;;  %5895 = vmatprep.mubr.msk.bf16.mxu1 %vm343_vm1, %v5184_v61  ;;  %v5185_v40 = vcombine.low %v917_v42, %v927_v58  ;;  %v932_v38 = vshll.u32 %v625_v34, 16  ;;  %v938_v20 = vshll.u32 %v7286_v13, 16  ;;  %v7325_v42 = vld [vmem:[%s6731_s17 + $0xac] sm:$0xf] }
  0x99   : > { %v942_v21 = vshrl.u32 %v7286_v13, 16  ;;  %6039 = vmatprep.mubr.msk.bf16.mxu0 %vm343_vm1, %v5448_v44  ;;  %v3051_v25 = vsel %vm6824_vm7, %v3049_v39, %v3050_v16  ;;  %v948_v47 = vshll.u32 %v7291_v15, 16  ;;  %v953_v32 = vshrl.u32 %v628_v18, 16 }
  0x9a   : > { %v956_v59 = vshll.u32 %v628_v18, 16  ;;  %5896 = vmatmul.mubr.msk.bf16.gmra.mrb[20].mxu1 %vm343_vm1, %v5185_v40  ;;  %v5449_v34 = vcombine.low %v3048_v17, %v3051_v25  ;;  %v934_v48 = vrot.slane %v932_v38, 5  ;;  %v940_v63 = vrot.slane %v938_v20, 5  ;;  %v7331_v38 = vld [vmem:[%s6731_s17 + $0xb0] sm:$0x1] }
  0x9b   : > { %v944_v4 = vrot.slane %v942_v21, 4  ;;  %v950_v5 = vrot.slane %v948_v47, 5  ;;  %v955_v7 = vrot.slane %v953_v32, 4  ;;  %v962_v37 = vshll.u32 %v7303_v19, 16  ;;  %v634_v32 = vld [vmem:[%s6731_s17 + $0xb4] sm:$0xf] }
  0x9c   : > { %v958_v8 = vrot.slane %v956_v59, 5  ;;  %6040 = vmatmul.mubr.msk.bf16.gmra.mrb[28].mxu0 %vm343_vm1, %v5449_v34  ;;  %v935_v57 = vor.u32 %v934_v48, %v931_v29  ;;  %v966_v24 = vshrl.u32 %v7303_v19, 16  ;;  %v972_v61 = vshll.u32 %v7315_v22, 16  ;;  %v6512_v34 = vld [vmem:[%s6731_s17 + $0x24] sm:$0xff]  }
  0x9d   : > { %v945_v16 = vor.u32 %v944_v4, %v940_v63  ;;  %v964_v17 = vrot.slane %v962_v37, 5  ;;  %6045 = vmatprep.mubr.msk.bf16.mxu0 %vm343_vm1, %v6511_v0  ;;  %v4236_v18 = vsel %vm392_vm0, %v7167_v28, 0  ;;  %v977_v58 = vshrl.u32 %v631_v55, 16  ;;  %v7342_v4 = vld [vmem:[%s6731_s17 + $0xb8] sm:$0xf] }
  0x9e   : > { %v959_v14 = vor.u32 %v958_v8, %v955_v7  ;;  %v936_v44 = vrot.slane %v935_v57, 4  ;;  %v968_v29 = vrot.slane %v966_v24, 4  ;;  %v974_v40 = vrot.slane %v972_v61, 5  ;;  %v7347_v57 = vld [vmem:[%s6731_s17 + $0xbc] sm:$0x1] }
  0x9f   : > { %v946_v39 = vrot.slane %v945_v16, 4  ;;  %v979_v21 = vrot.slane %v977_v58, 4  ;;  %v980_v25 = vshll.u32 %v631_v55, 16  ;;  %v986_v47 = vshll.u32 %v7325_v42, 16  ;;  %v6513_v16 = vld [vmem:[%s6731_s17 + $0x30] sm:$0xff]  }
  0xa0   : > { %v960_v20 = vrot.slane %v959_v14, 4  ;;  %v941_v59 = vsel %vm6783_vm6, %v936_v44, %v940_v63  ;;  %v969_v0 = vor.u32 %v968_v29, %v964_v17  ;;  %v990_v48 = vshrl.u32 %v7325_v42, 16  ;;  %v1318_v14 = vld [vmem:[%s6731_s17] sm:$0xe]  ;;  %v7358_v29 = vld [vmem:[%s8486_s1 + $0x10] sm:$0x3] }
  0xa1   : > { %v951_v28 = vsel %vm6783_vm6, %v946_v39, %v950_v5  ;;  %v982_v8 = vrot.slane %v980_v25, 5  ;;  %v988_v37 = vrot.slane %v986_v47, 5  ;;  %v996_v61 = vshll.u32 %v7331_v38, 16 }
  0xa2   : > { %v5186_v7 = vcombine.low %v941_v59, %v951_v28  ;;  %v965_v55 = vsel %vm6783_vm6, %v960_v20, %v964_v17  ;;  %v970_v63 = vrot.slane %v969_v0, 4  ;;  %v992_v24 = vrot.slane %v990_v48, 4  ;;  %v1319_v48 = vld [vmem:[%s6731_s17 + $0xc] sm:$0xe] }
  0xa3   : > { %v1001_v5 = vshrl.u32 %v634_v32, 16  ;;  %v983_v58 = vor.u32 %v982_v8, %v979_v21  ;;  %v1004_v44 = vshll.u32 %v634_v32, 16  ;;  %v1010_v39 = vshll.u32 %v7342_v4, 16 }
  0xa4   : > { %5899 = vmatprep.mubr.msk.bf16.mxu1 %vm343_vm1, %v5186_v7  ;;  %v1014_v17 = vshrl.u32 %v7342_v4, 16  ;;  %v975_v20 = vsel %vm6783_vm6, %v970_v63, %v974_v40  ;;  %6046 = vmatmul.mubr.msk.bf16.vlgmr.msra.gmra.mrb[0].mxu0 %vm343_vm1, %v6512_v34  ;;  %v993_v25 = vor.u32 %v992_v24, %v988_v37  ;;  %v998_v47 = vrot.slane %v996_v61, 5  ;;  %v6514_v63 = vld [vmem:[%s6731_s17 + $0x3c] sm:$0xff]   ;;  %v6545_v24 = vld [vmem:[%s6731_s17 + $0x4] sm:$0xf] }
  0xa5   : > { %v1003_v21 = vrot.slane %v1001_v5, 4  ;;  %v5187_v59 = vcombine.low %v965_v55, %v975_v20  ;;  %6078 = vmatpush3.bf16.msra.mxu0 %v4236_v18  ;;  %v984_v32 = vrot.slane %v983_v58, 4  ;;  %v1006_v28 = vrot.slane %v1004_v44, 5  ;;  %6049 = vmatprep.mubr.msk.bf16.mxu0 %vm343_vm1, %v6513_v16  ;;  %v6546_v61 = vld [vmem:[%s6731_s17 + $0x8] sm:$0x1] }
  0xa6   : > { %v1012_v0 = vrot.slane %v1010_v39, 5  ;;  %v994_v7 = vrot.slane %v993_v25, 4  ;;  %v1016_v8 = vrot.slane %v1014_v17, 4  ;;  %v1020_v40 = vshll.u32 %v7347_v57, 16  ;;  %6452 = vmatprep.subr.msk.bf16.mxu0 %vm392_vm0, %v7358_v29  ;;  %v1320_v17 = vld [vmem:[%s6731_s17 + $0x18] sm:$0xe] }
  0xa7   : > { %v5206_v34 = vrot.slane %v1318_v14, 9  ;;  %5900 = vmatmul.mubr.msk.bf16.gmra.mrb[24].mxu1 %vm343_vm1, %v5187_v59  ;;  %v989_v18 = vsel %vm6783_vm6, %v984_v32, %v988_v37  ;;  %v1007_v55 = vor.u32 %v1006_v28, %v1003_v21  ;;  %v1387_v16 = vrot.slane %v6545_v24, 5  ;;  %v6515_v59 = vld [vmem:[%s6731_s17 + $0x48] sm:$0xff]   ;;  %v6548_v24 = vld [vmem:[%s6731_s17 + $0x14] sm:$0x1] }
  0xa8   : > { %v1390_v5 = vrot.slane %v6546_v61, 5  ;;  %v7376_v58 = vrot.slane %v2476_v31, 4  ;;  %v999_v14 = vsel %vm6783_vm6, %v994_v7, %v998_v47  ;;  %v1017_v44 = vor.u32 %v1016_v8, %v1012_v0  ;;  %v6547_v31 = vld [vmem:[%s6731_s17 + $0x10] sm:$0xf] }
  0xa9   : > { %v1022_v39 = vrot.slane %v1020_v40, 5  ;;  %v5188_v20 = vcombine.low %v989_v18, %v999_v14  ;;  %v1008_v37 = vrot.slane %v1007_v55, 4  ;;  %v1388_v25 = vsel %vm6824_vm7, %v5206_v34, %v1387_v16  ;;  %v1322_v34 = vld [vmem:[%s6731_s17 + $0x30] sm:$0xe]  ;;  %v1323_v18 = vld [vmem:[%s6731_s17 + $0x3c] sm:$0xe] }
  0xaa   : > { %v1389_v21 = vrot.slane %v1387_v16, 4  ;;  %v1018_v32 = vrot.slane %v1017_v44, 4  ;;  %v5207_v26 = vrot.slane %v1319_v48, 9  ;;  %v1394_v28 = vrot.slane %v6547_v31, 5 }
  0xab   : > { %v1397_v61 = vrot.slane %v6548_v24, 5  ;;  %5903 = vmatprep.mubr.msk.bf16.mxu1 %vm343_vm1, %v5188_v20  ;;  %v1013_v47 = vsel %vm6783_vm6, %v1008_v37, %v1012_v0  ;;  %v5208_v8 = vrot.slane %v1320_v17, 9  ;;  %v1401_v40 = vrot.slane %v7027_v2, 5  ;;  %v1326_v24 = vld [vmem:[%s6731_s17 + $0x60] sm:$0xe] }
  0xac   : > { %v1391_v7 = vsel %vm6824_vm7, %v1389_v21, %v1390_v5  ;;  %v1023_v48 = vsel %vm6783_vm6, %v1018_v32, %v1022_v39  ;;  %6050 = vmatmul.mubr.msk.bf16.gmra.mrb[4].mxu0 %vm343_vm1, %v6514_v63  ;;  %v1396_v16 = vrot.slane %v1394_v28, 4  ;;  %v1404_v14 = vrot.slane %v7030_v30, 5 }
  0xad   : > { %v5223_v55 = vcombine.low %v1388_v25, %v1391_v7  ;;  %v5189_v0 = vcombine.low %v1013_v47, %v1023_v48  ;;  %6053 = vmatprep.mubr.msk.bf16.mxu0 %vm343_vm1, %v6515_v59  ;;  %v1403_v5 = vrot.slane %v1401_v40, 4  ;;  %v5209_v44 = vrot.slane %v1321_v54, 9  ;;  %v1324_v25 = vld [vmem:[%s6731_s17 + $0x48] sm:$0xe] }
  0xae   : > { %v1395_v2 = vsel %vm6824_vm7, %v5207_v26, %v1394_v28  ;;  %v1408_v17 = vrot.slane %v7048_v52, 5  ;;  %v1411_v39 = vrot.slane %v7053_v56, 5  ;;  %v5210_v63 = vrot.slane %v1322_v34, 9  ;;  %v6516_v52 = vld [vmem:[%s6731_s17 + $0x54] sm:$0xff]   ;;  %v6517_v26 = vld [vmem:[%s6731_s17 + $0x60] sm:$0xff]  }
  0xaf   : > { %5904 = vmatmul.mubr.msk.bf16.gmra.mrb[28].mxu1 %vm343_vm1, %v5189_v0  ;;  %v1398_v30 = vsel %vm6824_vm7, %v1396_v16, %v1397_v61  ;;  %v1402_v20 = vsel %vm6824_vm7, %v5208_v8, %v1401_v40  ;;  %v1415_v54 = vrot.slane %v7079_v27, 5  ;;  %v1418_v37 = vrot.slane %v7085_v33, 5 }
  0xb0   : > { %5909 = vmatprep.mubr.msk.bf16.mxu1 %vm343_vm1, %v5223_v55  ;;  %v1405_v56 = vsel %vm6824_vm7, %v1403_v5, %v1404_v14  ;;  %v7418_v21 = vsel %vm6824_vm7, %v5209_v44, %v1408_v17  ;;  %v1410_v59 = vrot.slane %v1408_v17, 4  ;;  %v5211_v32 = vrot.slane %v1323_v18, 9  ;;  %v1325_v55 = vld [vmem:[%s6731_s17 + $0x54] sm:$0xe]  ;;  %v1327_v44 = vld [vmem:[%s6731_s17 + $0x6c] sm:$0xe] }
  0xb1   : > { %v7423_v31 = vsel %vm6824_vm7, %v5210_v63, %v1415_v54  ;;  %v1417_v27 = vrot.slane %v1415_v54, 4  ;;  %v1422_v33 = vrot.slane %v7101_v12, 5  ;;  %v1425_v28 = vrot.slane %v7105_v1, 5 }
  0xb2   : > { %v7430_v61 = vsel %vm6824_vm7, %v1410_v59, %v1411_v39  ;;  %v5212_v47 = vrot.slane %v1324_v25, 9  ;;  %v1429_v7 = vrot.slane %v7127_v9, 5  ;;  %v1432_v8 = vrot.slane %v7134_v49, 5  ;;  %v1329_v25 = vld [vmem:[%s6731_s17 + $0x84] sm:$0xe] }
  0xb3   : > { %v8500_v40 = vshll.u32 %v7181_v43, 16  ;;  %v5224_v18 = vcombine.low %v1395_v2, %v1398_v30  ;;  %v7440_v12 = vsel %vm6824_vm7, %v1417_v27, %v1418_v37  ;;  %v1424_v1 = vrot.slane %v1422_v33, 4  ;;  %v1328_v30 = vld [vmem:[%s6731_s17 + $0x78] sm:$0xe] }
  0xb4   : > { %6054 = vmatmul.mubr.msk.bf16.gmra.mrb[8].mxu0 %vm343_vm1, %v6516_v52  ;;  %v5225_v48 = vcombine.low %v1402_v20, %v1405_v56  ;;  %v5226_v9 = vcombine.low %v7418_v21, %v7430_v61  ;;  %v7447_v49 = vsel %vm6824_vm7, %v5212_v47, %v1429_v7  ;;  %v1431_v43 = vrot.slane %v1429_v7, 4  ;;  %v6518_v52 = vld [vmem:[%s6731_s17 + $0x6c] sm:$0xff]  }
  0xb5   : > { %v7436_v34 = vrot.slane %v8500_v40, 5  ;;  %6057 = vmatprep.mubr.msk.bf16.mxu0 %vm343_vm1, %v6517_v26  ;;  %v5227_v16 = vcombine.low %v7423_v31, %v7440_v12  ;;  %v7455_v14 = vsel %vm6824_vm7, %v5211_v32, %v1422_v33  ;;  %v7459_v0 = vsel %vm6824_vm7, %v1424_v1, %v1425_v28  ;;  %v6549_v33 = vld [vmem:[%s8486_s1 + $0x8] sm:$0x3]  ;;  %v1330_v40 = vld [vmem:[%s6731_s17 + $0x90] sm:$0xe] }
  0xb6   : > { %v1955_v5 = vsel %vm392_vm0, %v7262_v46, 0  ;;  %v7466_v2 = vsel %vm6824_vm7, %v1431_v43, %v1432_v8  ;;  %v1436_v17 = vrot.slane %v7143_v50, 5  ;;  %v5214_v39 = vrot.slane %v1326_v24, 9 }
  0xb7   : > { %v1443_v63 = vrot.slane %v7190_v53, 5  ;;  %5910 = vmatmul.mubr.msk.bf16.vlgmr.msra.gmra.mrb[0].mxu1 %vm343_vm1, %v5224_v18  ;;  %v5229_v20 = vcombine.low %v7447_v49, %v7466_v2  ;;  %v5213_v54 = vrot.slane %v1325_v55, 9  ;;  %v1439_v46 = vrot.slane %v7149_v60, 5  ;;  %v6519_v60 = vld [vmem:[%s6731_s17 + $0x78] sm:$0xff]  }
  0xb8   : > { %v1446_v37 = vrot.slane %v7193_v51, 5  ;;  %5913 = vmatprep.mubr.msk.bf16.mxu1 %vm343_vm1, %v5225_v48  ;;  %5942 = vmatpush3.bf16.msra.mxu1 %v1955_v5  ;;  %v5215_v56 = vrot.slane %v1327_v44, 9  ;;  %v1450_v59 = vrot.slane %v7204_v10, 5  ;;  %v5228_v32 = vcombine.low %v7455_v14, %v7459_v0  ;;  %v1331_v55 = vld [vmem:[%s6731_s17 + $0x9c] sm:$0xe] }
  0xb9   : > { %v7481_v50 = vsel %vm6824_vm7, %v5214_v39, %v1443_v63  ;;  %v1445_v53 = vrot.slane %v1443_v63, 4  ;;  %v1453_v51 = vrot.slane %v7210_v35, 5  ;;  %v5216_v26 = vrot.slane %v1328_v30, 9  ;;  %6448 = vmatprep.subr.msk.bf16.mxu1 %vm392_vm0, %v6549_v33  ;;  %v7531_v63 = vld [vmem:[%s6731_s17 + $0x1c] sm:$0xf] }
  0xba   : > { %v1457_v27 = vrot.slane %v7231_v6, 5  ;;  %v1438_v28 = vrot.slane %v1436_v17, 4  ;;  %v7499_v24 = vsel %vm6824_vm7, %v5215_v56, %v1450_v59  ;;  %v1452_v35 = vrot.slane %v1450_v59, 4  ;;  %v6520_v59 = vld [vmem:[%s6731_s17 + $0x84] sm:$0xff]  }
  0xbb   : > { %v7495_v10 = vsel %vm6824_vm7, %v1445_v53, %v1446_v37  ;;  %v1460_v8 = vrot.slane %v7240_v11, 5  ;;  %v5217_v1 = vrot.slane %v1329_v25, 9  ;;  %v1464_v48 = vrot.slane %v7248_v36, 5  ;;  %v5531_v36 = vld [vmem:[%s6731_s17 + $0x18] sm:$0xf] }
  0xbc   : > { %v5231_v6 = vcombine.low %v7481_v50, %v7495_v10  ;;  %v7505_v47 = vsel %vm6824_vm7, %v5216_v26, %v1457_v27  ;;  %v1459_v7 = vrot.slane %v1457_v27, 4  ;;  %6058 = vmatmul.mubr.msk.bf16.gmra.mrb[12].mxu0 %vm343_vm1, %v6518_v52  ;;  %v7512_v18 = vsel %vm6824_vm7, %v1452_v35, %v1453_v51  ;;  %v7540_v37 = vld [vmem:[%s6731_s17 + $0x20] sm:$0x1]  ;;  %v5534_v25 = vld [vmem:[%s6731_s17 + $0x24] sm:$0xf] }
  0xbd   : > { %v1467_v43 = vrot.slane %v7255_v45, 5  ;;  %6061 = vmatprep.mubr.msk.bf16.mxu0 %vm343_vm1, %v6519_v60  ;;  %v7520_v11 = vsel %vm6824_vm7, %v5213_v54, %v1436_v17  ;;  %v5232_v5 = vcombine.low %v7499_v24, %v7512_v18  ;;  %v1471_v39 = vrot.slane %v7286_v13, 5  ;;  %v6521_v60 = vld [vmem:[%s6731_s17 + $0x90] sm:$0xff]   ;;  %v7576_v27 = vld [vmem:[%s6731_s17 + $0x28] sm:$0xf] }
  0xbe   : > { %v7526_v44 = vsel %vm6824_vm7, %v1459_v7, %v1460_v8  ;;  %v7537_v17 = vsel %vm6824_vm7, %v5217_v1, %v1464_v48  ;;  %v1466_v30 = vrot.slane %v1464_v48, 4  ;;  %v5218_v54 = vrot.slane %v1330_v40, 9  ;;  %v7588_v48 = vld [vmem:[%s6731_s17 + $0x2c] sm:$0x1] }
  0xbf   : > { %v5233_v45 = vcombine.low %v7505_v47, %v7526_v44  ;;  %5914 = vmatmul.mubr.msk.bf16.gmra.mrb[4].mxu1 %vm343_vm1, %v5226_v9  ;;  %v7549_v13 = vsel %vm6824_vm7, %v1438_v28, %v1439_v46  ;;  %v1474_v52 = vrot.slane %v7291_v15, 5  ;;  %v5219_v53 = vrot.slane %v1331_v55, 9  ;;  %v1332_v55 = vld [vmem:[%s6731_s17 + $0xa8] sm:$0xe] }
  0xc0   : > { %v1478_v56 = vrot.slane %v7303_v19, 5  ;;  %5917 = vmatprep.mubr.msk.bf16.mxu1 %vm343_vm1, %v5227_v16  ;;  %v7560_v21 = vsel %vm6824_vm7, %v1466_v30, %v1467_v43  ;;  %v1481_v61 = vrot.slane %v7315_v22, 5  ;;  %v3754_v9 = vshrl.u32 %v5531_v36, 16 }
  0xc1   : > { %v3757_v46 = vshll.u32 %v5531_v36, 16  ;;  %v5234_v15 = vcombine.low %v7537_v17, %v7560_v21  ;;  %v1473_v19 = vrot.slane %v1471_v39, 4  ;;  %v7572_v16 = vsel %vm6824_vm7, %v5218_v54, %v1471_v39 }
  0xc2   : > { %v7568_v31 = vsel %vm6824_vm7, %v5219_v53, %v1478_v56  ;;  %v1480_v12 = vrot.slane %v1478_v56, 4  ;;  %v3756_v51 = vrot.slane %v3754_v9, 4  ;;  %v3763_v26 = vshll.u32 %v7531_v63, 16  ;;  %v1333_v53 = vld [vmem:[%s6731_s17 + $0xb4] sm:$0xe] }
  0xc3   : > { %v3759_v22 = vrot.slane %v3757_v46, 5  ;;  %v3767_v28 = vshrl.u32 %v7531_v63, 16  ;;  %v3773_v35 = vshll.u32 %v7540_v37, 16  ;;  %v3778_v7 = vshrl.u32 %v5534_v25, 16  ;;  %v5537_v9 = vld [vmem:[%s6731_s17 + $0x30] sm:$0xf] }
  0xc4   : > { %v7580_v33 = vsel %vm6824_vm7, %v1480_v12, %v1481_v61  ;;  %6062 = vmatmul.mubr.msk.bf16.gmra.mrb[16].mxu0 %vm343_vm1, %v6520_v59  ;;  %v3765_v1 = vrot.slane %v3763_v26, 5  ;;  %v3781_v43 = vshll.u32 %v5534_v25, 16  ;;  %v7594_v39 = vsel %vm6824_vm7, %v1473_v19, %v1474_v52  ;;  %v6522_v52 = vld [vmem:[%s6731_s17 + $0x9c] sm:$0xff]  }
  0xc5   : > { %v5236_v8 = vcombine.low %v7568_v31, %v7580_v33  ;;  %v3760_v40 = vor.u32 %v3759_v22, %v3756_v51  ;;  %6065 = vmatprep.mubr.msk.bf16.mxu0 %vm343_vm1, %v6521_v60  ;;  %v3769_v36 = vrot.slane %v3767_v28, 4  ;;  %v3780_v30 = vrot.slane %v3778_v7, 4 }
  0xc6   : > { %v3787_v54 = vshll.u32 %v7576_v27, 16  ;;  %v5230_v56 = vcombine.low %v7520_v11, %v7549_v13  ;;  %v3783_v61 = vrot.slane %v3781_v43, 5  ;;  %v3791_v25 = vshrl.u32 %v7576_v27, 16  ;;  %v6523_v13 = vld [vmem:[%s6731_s17 + $0xa8] sm:$0xff]  }
  0xc7   : > { %v3761_v59 = vrot.slane %v3760_v40, 4  ;;  %5918 = vmatmul.mubr.msk.bf16.gmra.mrb[8].mxu1 %vm343_vm1, %v5228_v32  ;;  %v3770_v46 = vor.u32 %v3769_v36, %v3765_v1  ;;  %v3775_v60 = vrot.slane %v3773_v35, 5  ;;  %v3797_v12 = vshll.u32 %v7588_v48, 16  ;;  %v7621_v35 = vld [vmem:[%s6731_s17 + $0x34] sm:$0xf] }
  0xc8   : > { %v7607_v19 = vrot.slane %v3787_v54, 5  ;;  %5921 = vmatprep.mubr.msk.bf16.mxu1 %vm343_vm1, %v5229_v20  ;;  %v5235_v11 = vcombine.low %v7572_v16, %v7594_v39  ;;  %v3784_v14 = vor.u32 %v3783_v61, %v3780_v30  ;;  %v3793_v0 = vrot.slane %v3791_v25, 4  ;;  %v7629_v40 = vld [vmem:[%s6731_s17 + $0x38] sm:$0x1]  ;;  %v5540_v36 = vld [vmem:[%s6731_s17 + $0x3c] sm:$0xf] }
  0xc9   : > { %v5220_v32 = vrot.slane %v1332_v55, 9  ;;  %v3766_v51 = vsel %vm6783_vm6, %v3761_v59, %v3765_v1  ;;  %v3771_v22 = vrot.slane %v3770_v46, 4  ;;  %v1485_v26 = vrot.slane %v7325_v42, 5  ;;  %v7778_v39 = vld [vmem:[%s6731_s17 + $0x74] sm:$0x1] }
  0xca   : > { %v5221_v28 = vrot.slane %v1333_v53, 9  ;;  %v7623_v49 = vrot.slane %v3784_v14, 4  ;;  %v3794_v2 = vor.u32 %v3793_v0, %v7607_v19  ;;  %v1488_v20 = vrot.slane %v7331_v38, 5  ;;  %v7645_v53 = vld [vmem:[%s6731_s17 + $0x40] sm:$0xf] }
  0xcb   : > { %v1492_v7 = vrot.slane %v7342_v4, 5  ;;  %v3776_v1 = vsel %vm6783_vm6, %v3771_v22, %v3775_v60  ;;  %v1487_v43 = vrot.slane %v1485_v26, 4  ;;  %v1495_v42 = vrot.slane %v7347_v57, 5 }
  0xcc   : > { %v3802_v55 = vshrl.u32 %v5537_v9, 16  ;;  %6066 = vmatmul.mubr.msk.bf16.gmra.mrb[20].mxu0 %vm343_vm1, %v6522_v52  ;;  %v3795_v30 = vrot.slane %v3794_v2, 4  ;;  %v3799_v54 = vrot.slane %v3797_v12, 5  ;;  %v7638_v38 = vsel %vm392_vm0, %v7358_v29, 0  ;;  %v6524_v52 = vld [vmem:[%s6731_s17 + $0xb4] sm:$0xff]  }
  0xcd   : > { %v7642_v4 = vsel %vm6824_vm7, %v5220_v32, %v1485_v26  ;;  %6069 = vmatprep.mubr.msk.bf16.mxu0 %vm343_vm1, %v6523_v13  ;;  %v7650_v57 = vsel %vm6824_vm7, %v5221_v28, %v1492_v7  ;;  %v1494_v59 = vrot.slane %v1492_v7, 4  ;;  %v3805_v25 = vshll.u32 %v5537_v9, 16  ;;  %v7672_v13 = vld [vmem:[%s6731_s17 + $0x44] sm:$0x1]  ;;  %v5543_v28 = vld [vmem:[%s6731_s17 + $0x48] sm:$0xf] }
  0xce   : > { %v3804_v61 = vrot.slane %v3802_v55, 4  ;;  %v7653_v29 = vcombine.low %v3766_v51, %v3776_v1  ;;  %v3790_v46 = vsel %vm6783_vm6, %v7623_v49, %v7607_v19  ;;  %v3811_v60 = vshll.u32 %v7621_v35, 16  ;;  %v7686_v1 = vld [vmem:[%s6731_s17 + $0x4c] sm:$0xf] }
  0xcf   : > { %v3815_v12 = vshrl.u32 %v7621_v35, 16  ;;  %5922 = vmatmul.mubr.msk.bf16.gmra.mrb[12].mxu1 %vm343_vm1, %v5230_v56  ;;  %v7664_v14 = vsel %vm6824_vm7, %v1487_v43, %v1488_v20  ;;  %v7668_v9 = vsel %vm6824_vm7, %v1494_v59, %v1495_v42  ;;  %v3807_v0 = vrot.slane %v3805_v25, 5  ;;  %v6525_v56 = vld [vmem:[%s6731_s17 + $0xc0] sm:$0xff]  }
  0xd0   : > { %v3821_v32 = vshll.u32 %v7629_v40, 16  ;;  %5925 = vmatprep.mubr.msk.bf16.mxu1 %vm343_vm1, %v5231_v6  ;;  %v5238_v19 = vcombine.low %v7650_v57, %v7668_v9  ;;  %v3813_v51 = vrot.slane %v3811_v60, 5  ;;  %v3826_v26 = vshrl.u32 %v5540_v36, 16  ;;  %v7863_v9 = vld [vmem:[%s6731_s17 + $0xa0] sm:$0xf] }
  0xd1   : > { %v3817_v22 = vrot.slane %v3815_v12, 4  ;;  %v3800_v49 = vsel %vm6783_vm6, %v3795_v30, %v3799_v54  ;;  %v3808_v2 = vor.u32 %v3807_v0, %v3804_v61  ;;  %v3829_v20 = vshll.u32 %v5540_v36, 16  ;;  %v7697_v0 = vld [vmem:[%s6731_s17 + $0x50] sm:$0x1] }
  0xd2   : > { %v3835_v7 = vshll.u32 %v7645_v53, 16  ;;  %v3823_v10 = vrot.slane %v3821_v32, 5  ;;  %v3828_v6 = vrot.slane %v3826_v26, 4  ;;  %v3839_v43 = vshrl.u32 %v7645_v53, 16  ;;  %v5546_v26 = vld [vmem:[%s6731_s17 + $0x54] sm:$0xf] }
  0xd3   : > { %v3818_v50 = vor.u32 %v3817_v22, %v3813_v51  ;;  %v3809_v42 = vrot.slane %v3808_v2, 4  ;;  %v3831_v55 = vrot.slane %v3829_v20, 5  ;;  %v3850_v25 = vshrl.u32 %v5543_v28, 16  ;;  %v7706_v20 = vld [vmem:[%s6731_s17 + $0x58] sm:$0xf] }
  0xd4   : > { %v7689_v59 = vrot.slane %v3835_v7, 5  ;;  %6070 = vmatmul.mubr.msk.bf16.gmra.mrb[24].mxu0 %vm343_vm1, %v6524_v52  ;;  %v3841_v30 = vrot.slane %v3839_v43, 4  ;;  %v3845_v54 = vshll.u32 %v7672_v13, 16  ;;  %v3853_v61 = vshll.u32 %v5543_v28, 16 }
  0xd5   : > { %v3819_v36 = vrot.slane %v3818_v50, 4  ;;  %6073 = vmatprep.mubr.msk.bf16.mxu0 %vm343_vm1, %v6525_v56  ;;  %v3814_v60 = vsel %vm6783_vm6, %v3809_v42, %v3813_v51  ;;  %v3832_v12 = vor.u32 %v3831_v55, %v3828_v6  ;;  %v3852_v32 = vrot.slane %v3850_v25, 4  ;;  %v6526_v6 = vld [vmem:[%s6731_s17 + $0xcc] sm:$0xff]  }
  0xd6   : > { %v3859_v22 = vshll.u32 %v7686_v1, 16  ;;  %v3842_v2 = vor.u32 %v3841_v30, %v7689_v59  ;;  %v3855_v28 = vrot.slane %v3853_v61, 5  ;;  %v3863_v56 = vshrl.u32 %v7686_v1, 16  ;;  %v7735_v61 = vld [vmem:[%s6731_s17 + $0x64] sm:$0xf] }
  0xd7   : > { %v3824_v52 = vsel %vm6783_vm6, %v3819_v36, %v3823_v10  ;;  %5926 = vmatmul.mubr.msk.bf16.gmra.mrb[16].mxu1 %vm343_vm1, %v5232_v5  ;;  %v7712_v51 = vcombine.low %v3790_v46, %v3800_v49  ;;  %v5237_v7 = vcombine.low %v7642_v4, %v7664_v14  ;;  %v7716_v50 = vrot.slane %v3832_v12, 4  ;;  %v7727_v46 = vld [vmem:[%s6731_s17 + $0x5c] sm:$0x1]  ;;  %v5549_v36 = vld [vmem:[%s6731_s17 + $0x60] sm:$0xf] }
  0xd8   : > { %v7718_v10 = vrot.slane %v3859_v22, 5  ;;  %5929 = vmatprep.mubr.msk.bf16.mxu1 %vm343_vm1, %v5233_v45  ;;  %v3856_v24 = vor.u32 %v3855_v28, %v3852_v32  ;;  %v3865_v18 = vrot.slane %v3863_v56, 4  ;;  %v3869_v5 = vshll.u32 %v7697_v0, 16 }
  0xd9   : > { %v3874_v49 = vshrl.u32 %v5546_v26, 16  ;;  %v5582_v43 = vcombine.low %v3814_v60, %v3824_v52  ;;  %v3847_v42 = vrot.slane %v3845_v54, 5  ;;  %v3877_v55 = vshll.u32 %v5546_v26, 16 }
  0xda   : > { %v3883_v25 = vshll.u32 %v7706_v20, 16  ;;  %v3843_v30 = vrot.slane %v3842_v2, 4  ;;  %v7731_v47 = vrot.slane %v3856_v24, 4  ;;  %v3866_v44 = vor.u32 %v3865_v18, %v7718_v10  ;;  %v7745_v2 = vld [vmem:[%s6731_s17 + $0x68] sm:$0x1] }
  0xdb   : > { %v3876_v45 = vrot.slane %v3874_v49, 4  ;;  %v3838_v60 = vsel %vm6783_vm6, %v7716_v50, %v7689_v59  ;;  %v3879_v54 = vrot.slane %v3877_v55, 5  ;;  %v3887_v32 = vshrl.u32 %v7706_v20, 16  ;;  %v5552_v18 = vld [vmem:[%s6731_s17 + $0x6c] sm:$0xf] }
  0xdc   : > { %v3885_v12 = vrot.slane %v3883_v25, 5  ;;  %6074 = vmatmul.mubr.msk.bf16.gmra.mrb[28].mxu0 %vm343_vm1, %v6526_v6  ;;  %v3867_v22 = vrot.slane %v3866_v44, 4  ;;  %v3871_v26 = vrot.slane %v3869_v5, 5  ;;  %v3893_v52 = vshll.u32 %v7727_v46, 16 }
  0xdd   : > { %v3898_v28 = vshrl.u32 %v5549_v36, 16  ;;  %6079 = vmatprep.mubr.msk.bf16.mxu0 %vm343_vm1, %v7653_v29  ;;  %v3880_v56 = vor.u32 %v3879_v54, %v3876_v45  ;;  %v3889_v24 = vrot.slane %v3887_v32, 4  ;;  %v3901_v59 = vshll.u32 %v5549_v36, 16 }
  0xde   : > { %v3907_v50 = vshll.u32 %v7735_v61, 16  ;;  %v3848_v6 = vsel %vm6783_vm6, %v3843_v30, %v3847_v42  ;;  %v3862_v5 = vsel %vm6783_vm6, %v7731_v47, %v7718_v10  ;;  %v3911_v55 = vshrl.u32 %v7735_v61, 16  ;;  %v7763_v42 = vld [vmem:[%s6731_s17 + $0x70] sm:$0xf] }
  0xdf   : > { %v3900_v49 = vrot.slane %v3898_v28, 4  ;;  %5930 = vmatmul.mubr.msk.bf16.gmra.mrb[20].mxu1 %vm343_vm1, %v5234_v15  ;;  %v3881_v29 = vrot.slane %v3880_v56, 4  ;;  %v3890_v25 = vor.u32 %v3889_v24, %v3885_v12  ;;  %v3895_v36 = vrot.slane %v3893_v52, 5  ;;  %v5555_v28 = vld [vmem:[%s6731_s17 + $0x78] sm:$0xf] }
  0xe0   : > { %v3903_v44 = vrot.slane %v3901_v59, 5  ;;  %5933 = vmatprep.mubr.msk.bf16.mxu1 %vm343_vm1, %v5235_v11  ;;  %v7769_v10 = vrot.slane %v3907_v50, 5  ;;  %v3913_v30 = vrot.slane %v3911_v55, 4  ;;  %v3917_v17 = vshll.u32 %v7745_v2, 16  ;;  %v7788_v59 = vld [vmem:[%s6731_s17 + $0x7c] sm:$0xf] }
  0xe1   : > { %v3922_v21 = vshrl.u32 %v5552_v18, 16  ;;  %v3872_v15 = vsel %vm6783_vm6, %v3867_v22, %v3871_v26  ;;  %v3891_v47 = vrot.slane %v3890_v25, 4  ;;  %v3925_v54 = vshll.u32 %v5552_v18, 16 }
  0xe2   : > { %v3904_v45 = vor.u32 %v3903_v44, %v3900_v49  ;;  %v3886_v32 = vsel %vm6783_vm6, %v3881_v29, %v3885_v12  ;;  %v3914_v16 = vor.u32 %v3913_v30, %v7769_v10  ;;  %v3931_v52 = vshll.u32 %v7763_v42, 16 }
  0xe3   : > { %v3924_v11 = vrot.slane %v3922_v21, 4  ;;  %v3896_v56 = vsel %vm6783_vm6, %v3891_v47, %v3895_v36  ;;  %v3927_v22 = vrot.slane %v3925_v54, 5  ;;  %v3935_v26 = vshrl.u32 %v7763_v42, 16  ;;  %v7798_v36 = vld [vmem:[%s6731_s17 + $0x80] sm:$0x1] }
  0xe4   : > { %v7784_v24 = vrot.slane %v3904_v45, 4  ;;  %6080 = vmatmul.mubr.msk.bf16.vlgmr.msra.gmra.mrb[0].mxu0 %vm343_vm1, %v7712_v51  ;;  %v5583_v12 = vcombine.low %v3838_v60, %v3848_v6  ;;  %v3915_v50 = vrot.slane %v3914_v16, 4  ;;  %v3919_v18 = vrot.slane %v3917_v17, 5  ;;  %v5558_v17 = vld [vmem:[%s6731_s17 + $0x84] sm:$0xf] }
  0xe5   : > { %v7792_v49 = vrot.slane %v3931_v52, 5  ;;  %6112 = vmatpush3.bf16.msra.mxu0 %v7638_v38  ;;  %6083 = vmatprep.mubr.msk.bf16.mxu0 %vm343_vm1, %v5582_v43  ;;  %v3928_v55 = vor.u32 %v3927_v22, %v3924_v11  ;;  %v3937_v29 = vrot.slane %v3935_v26, 4  ;;  %v3941_v25 = vshll.u32 %v7778_v39, 16  ;;  %v7825_v54 = vld [vmem:[%s6731_s17 + $0x8c] sm:$0x1] }
  0xe6   : > { %v3946_v44 = vshrl.u32 %v5555_v28, 16  ;;  %v5584_v30 = vcombine.low %v3862_v5, %v3872_v15  ;;  %v7800_v51 = vcombine.low %v3886_v32, %v3896_v56  ;;  %v3949_v60 = vshll.u32 %v5555_v28, 16  ;;  %v7814_v15 = vld [vmem:[%s6731_s17 + $0x88] sm:$0xf]  ;;  %v5561_v52 = vld [vmem:[%s6731_s17 + $0x90] sm:$0xf] }
  0xe7   : > { %v3955_v6 = vshll.u32 %v7788_v59, 16  ;;  %5934 = vmatmul.mubr.msk.bf16.gmra.mrb[24].mxu1 %vm343_vm1, %v5236_v8  ;;  %v3910_v38 = vsel %vm6783_vm6, %v7784_v24, %v7769_v10  ;;  %v3929_v43 = vrot.slane %v3928_v55, 4  ;;  %v3938_v5 = vor.u32 %v3937_v29, %v7792_v49  ;;  %v7834_v26 = vld [vmem:[%s6731_s17 + $0x94] sm:$0xf] }
  0xe8   : > { %v3948_v21 = vrot.slane %v3946_v44, 4  ;;  %5937 = vmatprep.mubr.msk.bf16.mxu1 %vm343_vm1, %v5237_v7  ;;  %v3951_v31 = vrot.slane %v3949_v60, 5  ;;  %v3959_v8 = vshrl.u32 %v7788_v59, 16  ;;  %v3965_v47 = vshll.u32 %v7798_v36, 16 }
  0xe9   : > { %v3957_v33 = vrot.slane %v3955_v6, 5  ;;  %v3920_v10 = vsel %vm6783_vm6, %v3915_v50, %v3919_v18  ;;  %v3943_v45 = vrot.slane %v3941_v25, 5  ;;  %v3970_v32 = vshrl.u32 %v5558_v17, 16  ;;  %v6527_v50 = vld [vmem:[%s6731_s17 + $0xc] sm:$0xff]  }
  0xea   : > { %v3973_v16 = vshll.u32 %v5558_v17, 16  ;;  %v3939_v11 = vrot.slane %v3938_v5, 4  ;;  %v3952_v4 = vor.u32 %v3951_v31, %v3948_v21  ;;  %v3961_v14 = vrot.slane %v3959_v8, 4 }
  0xeb   : > { %v3979_v7 = vshll.u32 %v7814_v15, 16  ;;  %v3934_v28 = vsel %vm6783_vm6, %v3929_v43, %v7792_v49  ;;  %v3972_v56 = vrot.slane %v3970_v32, 4  ;;  %v3983_v22 = vshrl.u32 %v7814_v15, 16 }
  0xec   : > { %v3975_v24 = vrot.slane %v3973_v16, 5  ;;  %6084 = vmatmul.mubr.msk.bf16.gmra.mrb[4].mxu0 %vm343_vm1, %v5583_v12  ;;  %v3953_v18 = vrot.slane %v3952_v4, 4  ;;  %v3962_v55 = vor.u32 %v3961_v14, %v3957_v33  ;;  %v3967_v29 = vrot.slane %v3965_v47, 5  ;;  %v7845_v12 = vld [vmem:[%s6731_s17 + $0x98] sm:$0x1] }
  0xed   : > { %v7838_v25 = vrot.slane %v3979_v7, 5  ;;  %6087 = vmatprep.mubr.msk.bf16.mxu0 %vm343_vm1, %v5584_v30  ;;  %v3985_v49 = vrot.slane %v3983_v22, 4  ;;  %v3989_v60 = vshll.u32 %v7825_v54, 16  ;;  %v3994_v6 = vshrl.u32 %v5561_v52, 16  ;;  %v7867_v7 = vld [vmem:[%s6731_s17 + $0xa4] sm:$0x1] }
  0xee   : > { %v3976_v44 = vor.u32 %v3975_v24, %v3972_v56  ;;  %v3944_v17 = vsel %vm6783_vm6, %v3939_v11, %v3943_v45  ;;  %v3963_v43 = vrot.slane %v3962_v55, 4  ;;  %v3997_v5 = vshll.u32 %v5561_v52, 16  ;;  %v5564_v45 = vld [vmem:[%s6731_s17 + $0x9c] sm:$0xf] }
  0xef   : > { %v4003_v21 = vshll.u32 %v7834_v26, 16  ;;  %5938 = vmatmul.mubr.msk.bf16.gmra.mrb[28].mxu1 %vm343_vm1, %v5238_v19  ;;  %v5586_v30 = vcombine.low %v3910_v38, %v3920_v10  ;;  %v3958_v31 = vsel %vm6783_vm6, %v3953_v18, %v3957_v33  ;;  %v3986_v8 = vor.u32 %v3985_v49, %v7838_v25  ;;  %v6528_v24 = vld [vmem:[%s6731_s17 + $0x18] sm:$0xff]  }
  0xf0   : > { %v3996_v47 = vrot.slane %v3994_v6, 4  ;;  %5943 = vmatprep.mubr.msk.bf16.mxu1 %vm343_vm1, %v6527_v50  ;;  %v3968_v32 = vsel %vm6783_vm6, %v3963_v43, %v3967_v29  ;;  %v3999_v16 = vrot.slane %v3997_v5, 5  ;;  %v4007_v57 = vshrl.u32 %v7834_v26, 16  ;;  %v6529_v29 = vld [vmem:[%s6731_s17 + $0x24] sm:$0xff]  }
  0xf1   : > { %v7859_v11 = vrot.slane %v4003_v21, 5  ;;  %v5587_v19 = vcombine.low %v3934_v28, %v3944_v17  ;;  %v3977_v38 = vrot.slane %v3976_v44, 4  ;;  %v3991_v33 = vrot.slane %v3989_v60, 5  ;;  %v5567_v28 = vld [vmem:[%s6731_s17 + $0xa8] sm:$0xf] }
  0xf2   : > { %v4013_v10 = vshll.u32 %v7845_v12, 16  ;;  %v4000_v4 = vor.u32 %v3999_v16, %v3996_v47  ;;  %v4009_v14 = vrot.slane %v4007_v57, 4  ;;  %v4018_v52 = vshrl.u32 %v5564_v45, 16  ;;  %v7878_v17 = vld [vmem:[%s6731_s17 + $0xac] sm:$0xf] }
  0xf3   : > { %v4021_v56 = vshll.u32 %v5564_v45, 16  ;;  %v5588_v22 = vcombine.low %v3958_v31, %v3968_v32  ;;  %v3987_v50 = vrot.slane %v3986_v8, 4  ;;  %v4027_v18 = vshll.u32 %v7863_v9, 16 }
  0xf4   : > { %v4031_v55 = vshrl.u32 %v7863_v9, 16  ;;  %6088 = vmatmul.mubr.msk.bf16.gmra.mrb[8].mxu0 %vm343_vm1, %v7800_v51  ;;  %v4001_v44 = vrot.slane %v4000_v4, 4  ;;  %v4010_v49 = vor.u32 %v4009_v14, %v7859_v11  ;;  %v4015_v60 = vrot.slane %v4013_v10, 5  ;;  %v5570_v10 = vld [vmem:[%s6731_s17 + $0xb4] sm:$0xf] }
  0xf5   : > { %v4020_v6 = vrot.slane %v4018_v52, 4  ;;  %6091 = vmatprep.mubr.msk.bf16.mxu0 %vm343_vm1, %v5586_v30  ;;  %v4023_v43 = vrot.slane %v4021_v56, 5  ;;  %v7881_v5 = vrot.slane %v4027_v18, 5  ;;  %v4037_v31 = vshll.u32 %v7867_v7, 16  ;;  %v7900_v14 = vld [vmem:[%s6731_s17 + $0xb8] sm:$0xf] }
  0xf6   : > { %v4033_v21 = vrot.slane %v4031_v55, 4  ;;  %v3982_v51 = vsel %vm6783_vm6, %v3977_v38, %v7838_v25  ;;  %v4011_v8 = vrot.slane %v4010_v49, 4  ;;  %v4042_v47 = vshrl.u32 %v5567_v28, 16 }
  0xf7   : > { %v4045_v45 = vshll.u32 %v5567_v28, 16  ;;  %5944 = vmatmul.mubr.msk.bf16.vlgmr.msra.gmra.mrb[0].mxu1 %vm343_vm1, %v6528_v24  ;;  %v3992_v30 = vsel %vm6783_vm6, %v3987_v50, %v3991_v33  ;;  %v4024_v32 = vor.u32 %v4023_v43, %v4020_v6  ;;  %v4051_v57 = vshll.u32 %v7878_v17, 16 }
  0xf8   : > { %v4034_v16 = vor.u32 %v4033_v21, %v7881_v5  ;;  %5947 = vmatprep.mubr.msk.bf16.mxu1 %vm343_vm1, %v6529_v29  ;;  %6154 = vmatpush3.bf16.msra.mxu1 %v6717_v3  ;;  %v4006_v25 = vsel %vm6783_vm6, %v4001_v44, %v7859_v11  ;;  %v4044_v38 = vrot.slane %v4042_v47, 4  ;;  %v4055_v33 = vshrl.u32 %v7878_v17, 16  ;;  %v7909_v3 = vld [vmem:[%s6731_s17 + $0xb0] sm:$0x1]  ;;  %v5573_v21 = vld [vmem:[%s6731_s17 + $0xc0] sm:$0xf] }
  0xf9   : > { %v4047_v4 = vrot.slane %v4045_v45, 5  ;;  %v4016_v52 = vsel %vm6783_vm6, %v4011_v8, %v4015_v60  ;;  %v7904_v56 = vrot.slane %v4024_v32, 4  ;;  %v7906_v24 = vrot.slane %v4037_v31, 5  ;;  %v6530_v11 = vld [vmem:[%s6731_s17 + $0x30] sm:$0xff]   ;;  %v7919_v60 = vld [vmem:[%s6731_s17 + $0xbc] sm:$0x1] }
  0xfa   : > { %v7911_v50 = vrot.slane %v4051_v57, 5  ;;  %v7914_v18 = vrot.slane %v4034_v16, 4  ;;  %v4057_v28 = vrot.slane %v4055_v33, 4  ;;  %v4066_v29 = vshrl.u32 %v5570_v10, 16  ;;  %8501 = vst [vmem:[#allocation5_spill] sm:$0xff] %v7919_v60  ;;  %v6531_v31 = vld [vmem:[%s6731_s17 + $0x3c] sm:$0xff]  }
  0xfb   : > { %v4048_v55 = vor.u32 %v4047_v4, %v4044_v38  ;;  %v2479_v44 = vor.u32 %v7376_v58, %v7197_v62  ;;  %v5589_v49 = vcombine.low %v3982_v51, %v3992_v30  ;;  %v4069_v6 = vshll.u32 %v5570_v10, 16  ;;  %v7930_v16 = vld [vmem:[%s6731_s17 + $0xc4] sm:$0xf]  ;;  %v7946_v38 = vld [vmem:[%s6731_s17 + $0xc8] sm:$0x1] }
  0xfc   : > { %v4075_v43 = vshll.u32 %v7900_v14, 16  ;;  %6092 = vmatmul.mubr.msk.bf16.gmra.mrb[12].mxu0 %vm343_vm1, %v5587_v19  ;;  %v5590_v8 = vcombine.low %v4006_v25, %v4016_v52  ;;  %v4058_v45 = vor.u32 %v4057_v28, %v7911_v50  ;;  %v4061_v32 = vshll.u32 %v7909_v3, 16  ;;  %8502 = vst [vmem:[#allocation6_spill] sm:$0xff] %v7930_v16 }
  0xfd   : > { %v7925_v47 = vrot.slane %v4048_v55, 4  ;;  %6095 = vmatprep.mubr.msk.bf16.mxu0 %vm343_vm1, %v5588_v22  ;;  %v4068_v58 = vrot.slane %v4066_v29, 4  ;;  %v4071_v51 = vrot.slane %v4069_v6, 5  ;;  %v4079_v57 = vshrl.u32 %v7900_v14, 16 }
  0xfe   : > { %v7933_v30 = vrot.slane %v4075_v43, 5  ;;  %v4030_v19 = vsel %vm6783_vm6, %v7904_v56, %v7881_v5  ;;  %v4040_v10 = vsel %vm6783_vm6, %v7914_v18, %v7906_v24  ;;  %v4085_v25 = vshll.u32 %v7919_v60, 16  ;;  %v5576_v5 = vld [vmem:[%s6731_s17 + $0xcc] sm:$0xf] }
  0xff   : > { %v4090_v22 = vshrl.u32 %v5573_v21, 16  ;;  %5948 = vmatmul.mubr.msk.bf16.gmra.mrb[4].mxu1 %vm343_vm1, %v6530_v11  ;;  %v4072_v4 = vor.u32 %v4071_v51, %v4068_v58  ;;  %v4081_v33 = vrot.slane %v4079_v57, 4  ;;  %v4093_v52 = vshll.u32 %v5573_v21, 16  ;;  %v7959_v21 = vld [vmem:[%s6731_s17 + $0xd0] sm:$0xf]  ;;  %v6532_v51 = vld [vmem:[%s6731_s17 + $0x48] sm:$0xff]  }
 0x100   : > { %v4099_v55 = vshll.u32 %v7930_v16, 16  ;;  %5951 = vmatprep.mubr.msk.bf16.mxu1 %vm343_vm1, %v6531_v31  ;;  %v4059_v56 = vrot.slane %v4058_v45, 4  ;;  %v4063_v28 = vrot.slane %v4061_v32, 5  ;;  %v4103_v18 = vshrl.u32 %v7930_v16, 16  ;;  %8503 = vst [vmem:[#allocation7_spill] sm:$0xff] %v7959_v21 }
 0x101   : > { %v4092_v24 = vrot.slane %v4090_v22, 4  ;;  %v4054_v11 = vsel %vm6783_vm6, %v7925_v47, %v7911_v50  ;;  %v4073_v29 = vrot.slane %v4072_v4, 4  ;;  %v4082_v6 = vor.u32 %v4081_v33, %v7933_v30  ;;  %v6533_v50 = vld [vmem:[%s6731_s17 + $0x54] sm:$0xff]  }
 0x102   : > { %v4095_v43 = vrot.slane %v4093_v52, 5  ;;  %v4101_v58 = vrot.slane %v4099_v55, 5  ;;  %v4105_v31 = vrot.slane %v4103_v18, 4  ;;  %v4109_v45 = vshll.u32 %v7946_v38, 16  ;;  %v7968_v33 = vld [vmem:[%s6731_s17 + $0xd4] sm:$0x1] }
 0x103   : > { %v4114_v32 = vshrl.u32 %v5576_v5, 16  ;;  %v4083_v57 = vrot.slane %v4082_v6, 4  ;;  %v4087_v22 = vrot.slane %v4085_v25, 5  ;;  %v4117_v60 = vshll.u32 %v5576_v5, 16 }
 0x104   : > { %v4096_v16 = vor.u32 %v4095_v43, %v4092_v24  ;;  %6096 = vmatmul.mubr.msk.bf16.gmra.mrb[16].mxu0 %vm343_vm1, %v5589_v49  ;;  %v4064_v47 = vsel %vm6783_vm6, %v4059_v56, %v4063_v28  ;;  %v4106_v4 = vor.u32 %v4105_v31, %v4101_v58  ;;  %v4123_v55 = vshll.u32 %v7959_v21, 16  ;;  %v5612_v24 = vld [vmem:[%s6731_s17 + $0x18] sm:$0xe] }
 0x105   : > { %v4116_v52 = vrot.slane %v4114_v32, 4  ;;  %6099 = vmatprep.mubr.msk.bf16.mxu0 %vm343_vm1, %v5590_v8  ;;  %v4111_v6 = vrot.slane %v4109_v45, 5  ;;  %v4119_v25 = vrot.slane %v4117_v60, 5  ;;  %v4127_v5 = vshrl.u32 %v7959_v21, 16  ;;  %v5613_v45 = vld [vmem:[%s6731_s17 + $0x24] sm:$0xe] }
 0x106   : > { %v4097_v18 = vrot.slane %v4096_v16, 4  ;;  %v7974_v49 = vrot.slane %v2479_v44, 4  ;;  %v4078_v56 = vsel %vm6783_vm6, %v4073_v29, %v7933_v30  ;;  %v4107_v28 = vrot.slane %v4106_v4, 4  ;;  %v5614_v29 = vld [vmem:[%s6731_s17 + $0x30] sm:$0xe] }
 0x107   : > { %v7979_v43 = vrot.slane %v4123_v55, 5  ;;  %5952 = vmatmul.mubr.msk.bf16.gmra.mrb[8].mxu1 %vm343_vm1, %v6532_v51  ;;  %v4088_v8 = vsel %vm6783_vm6, %v4083_v57, %v4087_v22  ;;  %v4120_v60 = vor.u32 %v4119_v25, %v4116_v52  ;;  %v4129_v16 = vrot.slane %v4127_v5, 4  ;;  %v6534_v52 = vld [vmem:[%s6731_s17 + $0x60] sm:$0xff]   ;;  %v5615_v5 = vld [vmem:[%s6731_s17 + $0x3c] sm:$0xe] }
 0x108   : > { %v4133_v31 = vshll.u32 %v7968_v33, 16  ;;  %5955 = vmatprep.mubr.msk.bf16.mxu1 %vm343_vm1, %v6533_v50  ;;  %v5591_v44 = vcombine.low %v4030_v19, %v4040_v10  ;;  %v5592_v32 = vcombine.low %v4054_v11, %v4064_v47  ;;  %v5628_v21 = vrot.slane %v5612_v24, 9 }
 0x109   : > { %v4497_v30 = vrot.slane %v7531_v63, 5  ;;  %v4102_v51 = vsel %vm6783_vm6, %v4097_v18, %v4101_v58  ;;  %v4112_v57 = vsel %vm6783_vm6, %v4107_v28, %v4111_v6  ;;  %v4121_v22 = vrot.slane %v4120_v60, 4  ;;  %v6535_v58 = vld [vmem:[%s6731_s17 + $0x6c] sm:$0xff]  }
 0x10a   : > { %v4130_v4 = vor.u32 %v4129_v16, %v7979_v43  ;;  %v5593_v50 = vcombine.low %v4078_v56, %v4088_v8  ;;  %v4500_v10 = vrot.slane %v7540_v37, 5  ;;  %v5629_v11 = vrot.slane %v5613_v45, 9  ;;  %v5350_v37 = vld [vmem:[%s6731_s17 + $0x84] sm:$0xf] }
 0x10b   : > { %v4499_v19 = vrot.slane %v4497_v30, 4  ;;  %v4135_v63 = vrot.slane %v4133_v31, 5  ;;  %v5630_v55 = vrot.slane %v5614_v29, 9  ;;  %v4511_v25 = vrot.slane %v7621_v35, 5 }
 0x10c   : > { %v4131_v47 = vrot.slane %v4130_v4, 4  ;;  %6100 = vmatmul.mubr.msk.bf16.gmra.mrb[20].mxu0 %vm343_vm1, %v5591_v44  ;;  %v5594_v18 = vcombine.low %v4102_v51, %v4112_v57  ;;  %v8002_v6 = vsel %vm6824_vm7, %v5628_v21, %v4497_v30  ;;  %v4504_v24 = vrot.slane %v7576_v27, 5  ;;  %v5353_v44 = vld [vmem:[%s6731_s17 + $0x90] sm:$0xf] }
 0x10d   : > { %v4514_v56 = vrot.slane %v7629_v40, 5  ;;  %6103 = vmatprep.mubr.msk.bf16.mxu0 %vm343_vm1, %v5592_v32  ;;  %v4126_v35 = vsel %vm6783_vm6, %v4121_v22, %v7979_v43  ;;  %v4507_v28 = vrot.slane %v7588_v48, 5  ;;  %v8014_v8 = vsel %vm6824_vm7, %v5630_v55, %v4511_v25 }
 0x10e   : > { %v4513_v21 = vrot.slane %v4511_v25, 4  ;;  %v8018_v27 = vsel %vm6824_vm7, %v4499_v19, %v4500_v10  ;;  %v8022_v40 = vsel %vm6824_vm7, %v5629_v11, %v4504_v24  ;;  %v5631_v60 = vrot.slane %v5615_v5, 9 }
 0x10f   : > { %v4518_v16 = vrot.slane %v7645_v53, 5  ;;  %5956 = vmatmul.mubr.msk.bf16.gmra.mrb[12].mxu1 %vm343_vm1, %v6534_v52  ;;  %v4136_v48 = vsel %vm6783_vm6, %v4131_v47, %v4135_v63  ;;  %v4521_v31 = vrot.slane %v7672_v13, 5  ;;  %v2439_v45 = vshrl.u32 %v5350_v37, 16  ;;  %v6550_v13 = vld [vmem:[%s6731_s17 + $0x88] sm:$0xf]  ;;  %v6536_v63 = vld [vmem:[%s6731_s17 + $0x78] sm:$0xff]  }
 0x110   : > { %v8030_v43 = vsel %vm6824_vm7, %v4513_v21, %v4514_v56  ;;  %5959 = vmatprep.mubr.msk.bf16.mxu1 %vm343_vm1, %v6535_v58  ;;  %v2442_v29 = vshll.u32 %v5350_v37, 16  ;;  %v4506_v51 = vrot.slane %v4504_v24, 4  ;;  %v2448_v22 = vshll.u32 %v6550_v13, 16  ;;  %v5616_v47 = vld [vmem:[%s6731_s17 + $0x48] sm:$0xe] }
 0x111   : > { %v5647_v53 = vcombine.low %v8014_v8, %v8030_v43  ;;  %v8039_v32 = vsel %vm6824_vm7, %v5631_v60, %v4518_v16  ;;  %v4520_v30 = vrot.slane %v4518_v16, 4  ;;  %v2441_v57 = vrot.slane %v2439_v45, 4  ;;  %v5617_v24 = vld [vmem:[%s6731_s17 + $0x54] sm:$0xe]  ;;  %v6537_v56 = vld [vmem:[%s6731_s17 + $0x84] sm:$0xff]  }
 0x112   : > { %v2452_v4 = vshrl.u32 %v6550_v13, 16  ;;  %v2444_v19 = vrot.slane %v2442_v29, 5  ;;  %v2463_v10 = vshrl.u32 %v5353_v44, 16  ;;  %v2466_v11 = vshll.u32 %v5353_v44, 16  ;;  %v5356_v29 = vld [vmem:[%s6731_s17 + $0x9c] sm:$0xf] }
 0x113   : > { %v8044_v52 = vsel %vm6824_vm7, %v4520_v30, %v4521_v31  ;;  %v5595_v55 = vcombine.low %v4126_v35, %v4136_v48  ;;  %v5645_v25 = vcombine.low %v8002_v6, %v8018_v27  ;;  %v8052_v58 = vrot.slane %v2448_v22, 5  ;;  %v6551_v6 = vld [vmem:[%s6731_s17 + $0x8c] sm:$0x1] }
 0x114   : > { %v5648_v5 = vcombine.low %v8039_v32, %v8044_v52  ;;  %6104 = vmatmul.mubr.msk.bf16.gmra.mrb[24].mxu0 %vm343_vm1, %v5593_v50  ;;  %v2454_v37 = vrot.slane %v2452_v4, 4  ;;  %v2465_v21 = vrot.slane %v2463_v10, 4  ;;  %v2468_v60 = vrot.slane %v2466_v11, 5  ;;  %v6559_v52 = vld [vmem:[%s6731_s17 + $0xc8] sm:$0x1] }
 0x115   : > { %v2485_v35 = vsel %vm6783_vm6, %v7974_v49, %v7436_v34  ;;  %6107 = vmatprep.mubr.msk.bf16.mxu0 %vm343_vm1, %v5594_v18  ;;  %v2458_v27 = vshll.u32 %v6551_v6, 16  ;;  %v5632_v16 = vrot.slane %v5616_v47, 9  ;;  %v4525_v48 = vrot.slane %v7686_v1, 5  ;;  %v6552_v6 = vld [vmem:[%s6731_s17 + $0xa0] sm:$0xf] }
 0x116   : > { %v4528_v31 = vrot.slane %v7697_v0, 5  ;;  %v2445_v50 = vor.u32 %v2444_v19, %v2441_v57  ;;  %v2469_v45 = vor.u32 %v2468_v60, %v2465_v21  ;;  %v5633_v44 = vrot.slane %v5617_v24, 9 }
 0x117   : > { %v4532_v30 = vrot.slane %v7706_v20, 5  ;;  %5960 = vmatmul.mubr.msk.bf16.gmra.mrb[16].mxu1 %vm343_vm1, %v6536_v63  ;;  %v8070_v34 = vsel %vm6824_vm7, %v4506_v51, %v4507_v28  ;;  %v8074_v49 = vsel %vm6824_vm7, %v5632_v16, %v4525_v48  ;;  %v4527_v1 = vrot.slane %v4525_v48, 4  ;;  %v6538_v63 = vld [vmem:[%s6731_s17 + $0x90] sm:$0xff]  }
 0x118   : > { %v4535_v0 = vrot.slane %v7727_v46, 5  ;;  %5963 = vmatprep.mubr.msk.bf16.mxu1 %vm343_vm1, %v6537_v56  ;;  %v2455_v20 = vor.u32 %v2454_v37, %v8052_v58  ;;  %v2470_v18 = vrot.slane %v2469_v45, 4  ;;  %v2460_v28 = vrot.slane %v2458_v27, 5  ;;  %v5359_v46 = vld [vmem:[%s6731_s17 + $0xa8] sm:$0xf] }
 0x119   : > { %v8081_v57 = vsel %vm6824_vm7, %v5633_v44, %v4532_v30  ;;  %v4534_v13 = vrot.slane %v4532_v30, 4  ;;  %v8085_v51 = vsel %vm6824_vm7, %v4527_v1, %v4528_v31  ;;  %v2487_v22 = vshrl.u32 %v5356_v29, 16  ;;  %v6554_v1 = vld [vmem:[%s6731_s17 + $0xa4] sm:$0x1] }
 0x11a   : > { %v2490_v4 = vshll.u32 %v5356_v29, 16  ;;  %v2446_v19 = vrot.slane %v2445_v50, 4  ;;  %v2475_v10 = vsel %vm6783_vm6, %v2470_v18, %v7197_v62  ;;  %v5649_v11 = vcombine.low %v8074_v49, %v8085_v51  ;;  %v6539_v62 = vld [vmem:[%s6731_s17 + $0x9c] sm:$0xff]   ;;  %v6553_v50 = vld [vmem:[%s6731_s17 + $0xac] sm:$0xf] }
 0x11b   : > { %v8095_v47 = vsel %vm6824_vm7, %v4534_v13, %v4535_v0  ;;  %v8098_v24 = vcombine.low %v2475_v10, %v2485_v35  ;;  %v2489_v37 = vrot.slane %v2487_v22, 4  ;;  %v2456_v60 = vrot.slane %v2455_v20, 4  ;;  %v5618_v20 = vld [vmem:[%s6731_s17 + $0x60] sm:$0xe] }
 0x11c   : > { %v5650_v56 = vcombine.low %v8081_v57, %v8095_v47  ;;  %v2492_v21 = vrot.slane %v2490_v4, 5  ;;  %6108 = vmatmul.mubr.msk.bf16.gmra.mrb[28].mxu0 %vm343_vm1, %v5595_v55  ;;  %v2496_v27 = vshll.u32 %v6552_v6, 16  ;;  %v2500_v16 = vshrl.u32 %v6552_v6, 16 }
 0x11d   : > { %v2511_v48 = vshrl.u32 %v5359_v46, 16  ;;  %6113 = vmatprep.mubr.msk.bf16.mxu0 %vm343_vm1, %v5645_v25  ;;  %v2514_v35 = vshll.u32 %v5359_v46, 16  ;;  %v2520_v45 = vshll.u32 %v6553_v50, 16  ;;  %v2524_v44 = vshrl.u32 %v6553_v50, 16 }
 0x11e   : > { %v2493_v31 = vor.u32 %v2492_v21, %v2489_v37  ;;  %v8107_v30 = vrot.slane %v2496_v27, 5  ;;  %v2502_v29 = vrot.slane %v2500_v16, 4  ;;  %v2506_v55 = vshll.u32 %v6554_v1, 16  ;;  %v6555_v37 = vld [vmem:[%s6731_s17 + $0xb0] sm:$0x1] }
 0x11f   : > { %v2513_v0 = vrot.slane %v2511_v48, 4  ;;  %5964 = vmatmul.mubr.msk.bf16.gmra.mrb[20].mxu1 %vm343_vm1, %v6538_v63  ;;  %v2516_v18 = vrot.slane %v2514_v35, 5  ;;  %v8112_v13 = vrot.slane %v2520_v45, 5  ;;  %v2526_v25 = vrot.slane %v2524_v44, 4  ;;  %v5362_v27 = vld [vmem:[%s6731_s17 + $0xb4] sm:$0xf] }
 0x120   : > { %5967 = vmatprep.mubr.msk.bf16.mxu1 %vm343_vm1, %v6539_v62  ;;  %v5646_v22 = vcombine.low %v8022_v40, %v8070_v34  ;;  %v2451_v4 = vsel %vm6783_vm6, %v2446_v19, %v8052_v58  ;;  %v8120_v46 = vrot.slane %v2493_v31, 4  ;;  %v2503_v10 = vor.u32 %v2502_v29, %v8107_v30  ;;  %v6540_v19 = vld [vmem:[%s6731_s17 + $0xa8] sm:$0xff]   ;;  %v6541_v31 = vld [vmem:[%s6731_s17 + $0xb4] sm:$0xff]   ;;  %v5365_v1 = vld [vmem:[%s6731_s17 + $0xc0] sm:$0xf] }
 0x121   : > { %v2461_v63 = vsel %vm6783_vm6, %v2456_v60, %v2460_v28  ;;  %v2530_v21 = vshll.u32 %v6555_v37, 16  ;;  %v5634_v6 = vrot.slane %v5618_v20, 9  ;;  %v4539_v62 = vrot.slane %v7735_v61, 5  ;;  %v5619_v48 = vld [vmem:[%s6731_s17 + $0x6c] sm:$0xe] }
 0x122   : > { %v8128_v16 = vrot.slane %v2503_v10, 4  ;;  %v8130_v40 = vrot.slane %v2506_v55, 5  ;;  %v2517_v58 = vor.u32 %v2516_v18, %v2513_v0  ;;  %v2527_v34 = vor.u32 %v2526_v25, %v8112_v13 }
 0x123   : > { %v5379_v28 = vcombine.low %v2451_v4, %v2461_v63  ;;  %v2499_v61 = vsel %vm6783_vm6, %v8120_v46, %v8107_v30  ;;  %v4546_v60 = vrot.slane %v7763_v42, 5  ;;  %v2535_v35 = vshrl.u32 %v5362_v27, 16 }
 0x124   : > { %6114 = vmatmul.mubr.msk.bf16.vlgmr.msra.gmra.mrb[0].mxu0 %vm343_vm1, %v5646_v22  ;;  %v2532_v50 = vrot.slane %v2530_v21, 5  ;;  %v8148_v45 = vsel %vm6824_vm7, %v5634_v6, %v4539_v62  ;;  %v4541_v44 = vrot.slane %v4539_v62, 4  ;;  %v4542_v29 = vrot.slane %v7745_v2, 5  ;;  %v6557_v6 = vld [vmem:[%s6731_s17 + $0xbc] sm:$0x1] }
 0x125   : > { %6117 = vmatprep.mubr.msk.bf16.mxu0 %vm343_vm1, %v5647_v53  ;;  %v2509_v42 = vsel %vm6783_vm6, %v8128_v16, %v8130_v40  ;;  %v2518_v30 = vrot.slane %v2517_v58, 4  ;;  %v2528_v55 = vrot.slane %v2527_v34, 4  ;;  %v5635_v0 = vrot.slane %v5619_v48, 9  ;;  %v6556_v53 = vld [vmem:[%s6731_s17 + $0xb8] sm:$0xf]  ;;  %v6542_v40 = vld [vmem:[%s6731_s17 + $0xc0] sm:$0xff]  }
 0x126   : > { %v2537_v8 = vrot.slane %v2535_v35, 4  ;;  %v2538_v43 = vshll.u32 %v5362_v27, 16  ;;  %v2544_v20 = vshll.u32 %v6556_v53, 16  ;;  %v2548_v18 = vshrl.u32 %v6556_v53, 16  ;;  %v5620_v16 = vld [vmem:[%s6731_s17 + $0x78] sm:$0xe] }
 0x127   : > { %5968 = vmatmul.mubr.msk.bf16.gmra.mrb[24].mxu1 %vm343_vm1, %v6540_v19  ;;  %v4548_v2 = vrot.slane %v4546_v60, 4  ;;  %v4549_v25 = vrot.slane %v7778_v39, 5  ;;  %v2559_v22 = vshrl.u32 %v5365_v1, 16  ;;  %v2562_v4 = vshll.u32 %v5365_v1, 16  ;;  %v6558_v19 = vld [vmem:[%s6731_s17 + $0xc4] sm:$0xf] }
 0x128   : > { %5971 = vmatprep.mubr.msk.bf16.mxu1 %vm343_vm1, %v6541_v31  ;;  %v8162_v46 = vsel %vm6824_vm7, %v4541_v44, %v4542_v29  ;;  %v2540_v10 = vrot.slane %v2538_v43, 5  ;;  %v8164_v63 = vrot.slane %v2544_v20, 5  ;;  %v2550_v37 = vrot.slane %v2548_v18, 4 }
 0x129   : > { %v2523_v21 = vsel %vm6783_vm6, %v2518_v30, %v8112_v13  ;;  %v2554_v62 = vshll.u32 %v6557_v6, 16  ;;  %v2561_v27 = vrot.slane %v2559_v22, 4  ;;  %v2564_v39 = vrot.slane %v2562_v4, 5  ;;  %v5624_v4 = vld [vmem:[%s6731_s17 + $0xa8] sm:$0xe] }
 0x12a   : > { %v2541_v58 = vor.u32 %v2540_v10, %v2537_v8  ;;  %v2551_v34 = vor.u32 %v2550_v37, %v8164_v63  ;;  %v2568_v48 = vshll.u32 %v6558_v19, 16  ;;  %v2572_v31 = vshrl.u32 %v6558_v19, 16  ;;  %v5623_v8 = vld [vmem:[%s6731_s17 + $0x9c] sm:$0xe] }
 0x12b   : > { %v2533_v13 = vsel %vm6783_vm6, %v2528_v55, %v2532_v50  ;;  %v8182_v35 = vsel %vm6824_vm7, %v5635_v0, %v4546_v60  ;;  %v8186_v44 = vsel %vm6824_vm7, %v4548_v2, %v4549_v25  ;;  %v4553_v29 = vrot.slane %v7788_v59, 5  ;;  %v5622_v2 = vld [vmem:[%s6731_s17 + $0x90] sm:$0xe] }
 0x12c   : > { %6118 = vmatmul.mubr.msk.bf16.gmra.mrb[4].mxu0 %vm343_vm1, %v5648_v5  ;;  %v2565_v32 = vor.u32 %v2564_v39, %v2561_v27  ;;  %v2578_v5 = vshll.u32 %v6559_v52, 16  ;;  %v5636_v50 = vrot.slane %v5620_v16, 9  ;;  %v4556_v60 = vrot.slane %v7798_v36, 5 }
 0x12d   : > { %6121 = vmatprep.mubr.msk.bf16.mxu0 %vm343_vm1, %v5649_v11  ;;  %v8195_v1 = vrot.slane %v2541_v58, 4  ;;  %v8197_v30 = vrot.slane %v2551_v34, 4  ;;  %v8199_v55 = vrot.slane %v2554_v62, 5  ;;  %v4555_v0 = vrot.slane %v4553_v29, 4  ;;  %v8207_v11 = vld [vmem:[%s6731_s17 + $0x84] sm:$0xe] }
 0x12e   : > { %v5381_v59 = vcombine.low %v2499_v61, %v2509_v42  ;;  %v8202_v49 = vrot.slane %v2568_v48, 5  ;;  %v8204_v51 = vrot.slane %v2572_v31, 4  ;;  %v8211_v36 = vcombine.low %v2523_v21, %v2533_v13  ;;  %v5626_v58 = vld [vmem:[%s6731_s17 + $0xc0] sm:$0xe] }
 0x12f   : > { %5972 = vmatmul.mubr.msk.bf16.gmra.mrb[28].mxu1 %vm343_vm1, %v6542_v40  ;;  %v5651_v43 = vcombine.low %v8148_v45, %v8162_v46  ;;  %v5652_v53 = vcombine.low %v8182_v35, %v8186_v44  ;;  %v4560_v61 = vrot.slane %v7814_v15, 5  ;;  %v8218_v42 = vrot.slane %v2565_v32, 4  ;;  %v8504_v31 = vld [vmem:[#allocation5_spill] sm:$0xff]  ;;  %v8505_v44 = vld [vmem:[#allocation6_spill] sm:$0xff] }
 0x130   : > { %5997 = vmatprep.mubr.msk.bf16.mxu1 %vm343_vm1, %v5379_v28  ;;  %v8220_v20 = vrot.slane %v2578_v5, 5  ;;  %v4554_v18 = vsel %vm6824_vm7, %v5636_v50, %v4553_v29  ;;  %v4557_v28 = vsel %vm6824_vm7, %v4555_v0, %v4556_v60  ;;  %v2547_v45 = vsel %vm6783_vm6, %v8195_v1, %v8164_v63  ;;  %v5625_v63 = vld [vmem:[%s6731_s17 + $0xb4] sm:$0xe] }
 0x131   : > { %v2557_v15 = vsel %vm6783_vm6, %v8197_v30, %v8199_v55  ;;  %v5637_v25 = vrot.slane %v8207_v11, 9  ;;  %v5639_v22 = vrot.slane %v5623_v8, 9  ;;  %v2575_v46 = vor.u32 %v8204_v51, %v8202_v49  ;;  %v8506_v60 = vld [vmem:[#allocation7_spill] sm:$0xff] }
 0x132   : > { %v4567_v10 = vrot.slane %v7834_v26, 5  ;;  %v4574_v37 = vrot.slane %v7863_v9, 5  ;;  %v4577_v21 = vrot.slane %v7867_v7, 5  ;;  %v5653_v6 = vcombine.low %v4554_v18, %v4557_v28 }
 0x133   : > { %v4562_v62 = vrot.slane %v4560_v61, 4  ;;  %v4563_v27 = vrot.slane %v7825_v54, 5  ;;  %v5638_v39 = vrot.slane %v5622_v2, 9  ;;  %v5640_v7 = vrot.slane %v5624_v4, 9 }
 0x134   : > { %6122 = vmatmul.mubr.msk.bf16.gmra.mrb[8].mxu0 %vm343_vm1, %v5650_v56  ;;  %v4575_v26 = vsel %vm6824_vm7, %v5639_v22, %v4574_v37  ;;  %v4576_v9 = vrot.slane %v4574_v37, 4  ;;  %v4581_v16 = vrot.slane %v7878_v17, 5  ;;  %v4570_v40 = vrot.slane %v7845_v12, 5  ;;  %v5627_v17 = vld [vmem:[%s6731_s17 + $0xcc] sm:$0xe] }
 0x135   : > { %6125 = vmatprep.mubr.msk.bf16.mxu0 %vm343_vm1, %v5651_v43  ;;  %v4584_v57 = vrot.slane %v7909_v3, 5  ;;  %v5641_v47 = vrot.slane %v5625_v63, 9  ;;  %v4588_v56 = vrot.slane %v7900_v14, 5  ;;  %v4569_v54 = vrot.slane %v4567_v10, 4 }
 0x136   : > { %v4578_v34 = vsel %vm6824_vm7, %v4576_v9, %v4577_v21  ;;  %v4582_v19 = vsel %vm6824_vm7, %v5640_v7, %v4581_v16  ;;  %v4583_v48 = vrot.slane %v4581_v16, 4  ;;  %v4591_v13 = vrot.slane %v8504_v31, 5 }
 0x137   : > { %5998 = vmatmul.mubr.msk.bf16.vlgmr.msra.gmra.mrb[20].mxu1 %vm343_vm1, %v8098_v24  ;;  %v5656_v12 = vcombine.low %v4575_v26, %v4578_v34  ;;  %v4589_v3 = vsel %vm6824_vm7, %v5641_v47, %v4588_v56  ;;  %v4590_v14 = vrot.slane %v4588_v56, 4  ;;  %v5642_v35 = vrot.slane %v5626_v58, 9 }
 0x138   : > { %6001 = vmatprep.mubr.msk.bf16.mxu1 %vm343_vm1, %v5381_v59  ;;  %v4585_v24 = vsel %vm6824_vm7, %v4583_v48, %v4584_v57  ;;  %v4595_v29 = vrot.slane %v8505_v44, 5  ;;  %v4598_v32 = vrot.slane %v7946_v38, 5  ;;  %v5643_v50 = vrot.slane %v5627_v17, 9 }
 0x139   : > { %v5657_v52 = vcombine.low %v4582_v19, %v4585_v24  ;;  %v4592_v5 = vsel %vm6824_vm7, %v4590_v14, %v4591_v13  ;;  %v4602_v1 = vrot.slane %v8506_v60, 5  ;;  %v4605_v59 = vrot.slane %v7968_v33, 5 }
 0x13a   : > { %v5658_v30 = vcombine.low %v4589_v3, %v4592_v5  ;;  %v4596_v55 = vsel %vm6824_vm7, %v5642_v35, %v4595_v29  ;;  %v4597_v0 = vrot.slane %v4595_v29, 4  ;;  %v5383_v51 = vcombine.low %v2547_v45, %v2557_v15 }
 0x13b   : > { %v2576_v11 = vrot.slane %v2575_v46, 4  ;;  %v4603_v38 = vsel %vm6824_vm7, %v5643_v50, %v4602_v1  ;;  %v4604_v8 = vrot.slane %v4602_v1, 4  ;;  %v4561_v43 = vsel %vm6824_vm7, %v5637_v25, %v4560_v61 }
 0x13c   : > { %6126 = vmatmul.mubr.msk.bf16.gmra.mrb[12].mxu0 %vm343_vm1, %v5652_v53  ;;  %v4564_v18 = vsel %vm6824_vm7, %v4562_v62, %v4563_v27  ;;  %v4599_v28 = vsel %vm6824_vm7, %v4597_v0, %v4598_v32  ;;  %v4568_v33 = vsel %vm6824_vm7, %v5638_v39, %v4567_v10  ;;  %v4571_v53 = vsel %vm6824_vm7, %v4569_v54, %v4570_v40  ;;  %v8336_v54 = vld [vmem:[%s8487_s2] ss:$0 sm:$0xff] }
 0x13d   : > { %6129 = vmatprep.mubr.msk.bf16.mxu0 %vm343_vm1, %v5653_v6  ;;  %v5659_v2 = vcombine.low %v4596_v55, %v4599_v28  ;;  %v4606_v45 = vsel %vm6824_vm7, %v4604_v8, %v4605_v59  ;;  %v2571_v15 = vsel %vm6783_vm6, %v8218_v42, %v8202_v49  ;;  %v2581_v25 = vsel %vm6783_vm6, %v2576_v11, %v8220_v20  ;;  %v6544_v20 = vld [vmem:[%s8488_s3 + $0x8] sm:$0xff]  }
 0x13e   : > { %v5660_v61 = vcombine.low %v4603_v38, %v4606_v45  ;;  %v5654_v22 = vcombine.low %v4561_v43, %v4564_v18  ;;  %v5655_v4 = vcombine.low %v4568_v33, %v4571_v53  ;;  %v5384_v46 = vcombine.low %v2571_v15, %v2581_v25 }
 0x13f   : > { %6002 = vmatmul.mubr.msk.bf16.gmra.mrb[24].mxu1 %vm343_vm1, %v8211_v36  ;;  %v6624_v36 = vmov 0.0  }
 0x140   : > { %6005 = vmatprep.mubr.msk.bf16.mxu1 %vm343_vm1, %v5383_v51  ;;  %6145 = vmatprep.subr.bf16.mxu1 %v6624_v36 }
 0x141   : > { %6146 = vmatpush3.bf16.msra.mxu1 %v6543_v23 }
 0x142   : > { %6147 = vmatprep.subr.bf16.mxu1 %v6624_v36 }
 0x144   : > { %6130 = vmatmul.mubr.msk.bf16.gmra.mrb[16].mxu0 %vm343_vm1, %v5654_v22 }
 0x145   : > { %6133 = vmatprep.mubr.msk.bf16.mxu0 %vm343_vm1, %v5655_v4  ;;  %6148 = vmatpush3.bf16.msra.mxu1 %v6544_v20 }
 0x147   : > { %6006 = vmatmul.mubr.msk.bf16.gmra.mrb[28].mxu1 %vm343_vm1, %v5384_v46 }
 0x148   : > { %6149 = vmatprep.mubr.msk.bf16.mxu1 %vm6625_vm8, %v6624_v36 }
 0x14c   : > { %6134 = vmatmul.mubr.msk.bf16.gmra.mrb[20].mxu0 %vm343_vm1, %v5656_v12 }
 0x14d   : > { %6137 = vmatprep.mubr.msk.bf16.mxu0 %vm343_vm1, %v5657_v52 }
 0x154   : > { %6138 = vmatmul.mubr.msk.bf16.gmra.mrb[24].mxu0 %vm343_vm1, %v5658_v30 }
 0x155   : > { %6141 = vmatprep.mubr.msk.bf16.mxu0 %vm343_vm1, %v5659_v2 }
 0x15c   : > { %6142 = vmatmul.mubr.msk.bf16.gmra.mrb[28].mxu0 %vm343_vm1, %v5660_v61 }
 0x1ca   : > { %v5945_v41 = vpop.f32.mrb[0].mxu1 }
 0x1cb   : > { %v1991_v49 = vpop.f32.mrb[1].mxu1  ;;  %v6155_v34 = vadd.f32 %v5945_v41, %v8336_v54 }
 0x1cc   : > { %v5946_v42 = vpop.f32.mrb[2].mxu1  ;;  %v6157_v19 = vadd.f32 %v8336_v54, %v1991_v49 }
 0x1cd   : > { %v1994_v10 = vpop.f32.mrb[3].mxu1  ;;  %v6159_v17 = vadd.f32 %v5946_v42, %v8336_v54 }
 0x1ce   : > { %v6161_v14 = vadd.f32 %v8336_v54, %v1994_v10 }
 0x1d2   : > { %v5949_v37 = vpop.f32.mrb[4].mxu1 }
 0x1d3   : > { %v2007_v21 = vpop.f32.mrb[5].mxu1  ;;  %v6163_v5 = vadd.f32 %v5949_v37, %v8336_v54 }
 0x1d4   : > { %v5950_v63 = vpop.f32.mrb[6].mxu1  ;;  %v6165_v50 = vadd.f32 %v8336_v54, %v2007_v21 }
 0x1d5   : > { %v2010_v6 = vpop.f32.mrb[7].mxu1  ;;  %v6167_v0 = vadd.f32 %v5950_v63, %v8336_v54 }
 0x1d6   : > { %v6169_v38 = vadd.f32 %v8336_v54, %v2010_v6 }
 0x1da   : > { %v5953_v62 = vpop.f32.mrb[8].mxu1 }
 0x1db   : > { %v2023_v27 = vpop.f32.mrb[9].mxu1  ;;  %v6171_v46 = vadd.f32 %v5953_v62, %v8336_v54 }
 0x1dc   : > { %v5954_v39 = vpop.f32.mrb[10].mxu1  ;;  %v6173_v23 = vadd.f32 %v8336_v54, %v2023_v27 }
 0x1dd   : > { %v2026_v26 = vpop.f32.mrb[11].mxu1  ;;  %v6175_v20 = vadd.f32 %v5954_v39, %v8336_v54 }
 0x1de   : > { %v6177_v63 = vadd.f32 %v8336_v54, %v2026_v26 }
 0x1e2   : > { %v8317_v9 = vpop.f32.mrb[12].mxu1 }
 0x1e3   : > { %v8319_v7 = vpop.f32.mrb[13].mxu1 }
 0x1e4   : > { %v8321_v16 = vpop.f32.mrb[14].mxu1 }
 0x1e5   : > { %v8323_v40 = vpop.f32.mrb[15].mxu1 }
 0x1ea   : > { %v8325_v57 = vpop.f32.mrb[16].mxu1 }
 0x1eb   : > { %v8327_v47 = vpop.f32.mrb[17].mxu1 }
 0x1ec   : > { %v8329_v56 = vpop.f32.mrb[18].mxu1 }
 0x1ed   : > { %v8331_v58 = vpop.f32.mrb[19].mxu1 }
 0x1f7   : > { %v6115_v48 = vpop.f32.mrb[0].mxu0 }
 0x1f8   : > { %v6156_v12 = vadd.f32 %v6155_v34, %v6115_v48  ;;  %v4742_v3 = vpop.f32.mrb[1].mxu0 }
 0x1f9   : > { %v6158_v31 = vadd.f32 %v6157_v19, %v4742_v3  ;;  %v6116_v13 = vpop.f32.mrb[2].mxu0 }
 0x1fa   : > { %v6160_v24 = vadd.f32 %v6159_v17, %v6116_v13  ;;  %v4745_v35 = vpop.f32.mrb[3].mxu0  ;;  %v4903_v32 = vmax.f32 %v6156_v12, 0.0 }
 0x1fb   : > { %v4901_v44 = vmax.f32 %v6158_v31, 0.0  ;;  %v6162_v29 = vadd.f32 %v6161_v14, %v4745_v35 }
 0x1fc   : > { %v4904_v1 = vmax.f32 %v6160_v24, 0.0  ;;  %v4937_v8 = vsel %vm4933_vm9, %v4903_v32, 0.0 }
 0x1fd   : > { %v4902_v52 = vmax.f32 %v6162_v29, 0.0  ;;  %v4934_v60 = vsel %vm4933_vm9, %v4901_v44, 0.0  ;;  %v6179_v29 = vadd.f32 %v8317_v9, %v8336_v54 }
 0x1fe   : > { %v4939_v2 = vsel %vm4933_vm9, %v4904_v1, 0.0  ;;  %v6183_v1 = vadd.f32 %v8321_v16, %v8336_v54 }
 0x1ff   : > { %v4935_v30 = vsel %vm4933_vm9, %v4902_v52, 0.0  ;;  %v6119_v55 = vpop.f32.mrb[4].mxu0  ;;  %v6181_v52 = vadd.f32 %v8336_v54, %v8319_v7 }
 0x200   : > { %v4936_v59 = vadd.f32 %v4935_v30, %v4934_v60  ;;  %v6164_v51 = vadd.f32 %v6163_v5, %v6119_v55  ;;  %v4758_v11 = vpop.f32.mrb[5].mxu0 }
 0x201   : > { %v6166_v43 = vadd.f32 %v6165_v50, %v4758_v11  ;;  %v6120_v18 = vpop.f32.mrb[6].mxu0 }
 0x202   : > { %v4938_v28 = vadd.f32 %v4937_v8, %v4936_v59  ;;  %v6168_v33 = vadd.f32 %v6167_v0, %v6120_v18  ;;  %v4761_v53 = vpop.f32.mrb[7].mxu0  ;;  %v4907_v25 = vmax.f32 %v6164_v51, 0.0  ;;  %v6185_v59 = vadd.f32 %v8336_v54, %v8323_v40 }
 0x203   : > { %v4905_v45 = vmax.f32 %v6166_v43, 0.0  ;;  %v6170_v61 = vadd.f32 %v6169_v38, %v4761_v53 }
 0x204   : > { %v4940_v15 = vadd.f32 %v4939_v2, %v4938_v28  ;;  %v4908_v49 = vmax.f32 %v6168_v33, 0.0  ;;  %v4945_v6 = vsel %vm4933_vm9, %v4907_v25, 0.0  ;;  %v6187_v25 = vadd.f32 %v8325_v57, %v8336_v54 }
 0x205   : > { %v4941_v22 = vsel %vm4933_vm9, %v4905_v45, 0.0  ;;  %v4906_v4 = vmax.f32 %v6170_v61, 0.0 }
 0x206   : > { %v4942_v41 = vadd.f32 %v4941_v22, %v4940_v15  ;;  %v4947_v12 = vsel %vm4933_vm9, %v4908_v49, 0.0  ;;  %v6191_v49 = vadd.f32 %v8329_v56, %v8336_v54 }
 0x207   : > { %v4943_v36 = vsel %vm4933_vm9, %v4906_v4, 0.0  ;;  %v6123_v42 = vpop.f32.mrb[8].mxu0  ;;  %v6189_v4 = vadd.f32 %v8336_v54, %v8327_v47 }
 0x208   : > { %v4944_v10 = vadd.f32 %v4943_v36, %v4942_v41  ;;  %v6172_v37 = vadd.f32 %v6171_v46, %v6123_v42  ;;  %v4774_v21 = vpop.f32.mrb[9].mxu0 }
 0x209   : > { %v6174_v34 = vadd.f32 %v6173_v23, %v4774_v21  ;;  %v6124_v19 = vpop.f32.mrb[10].mxu0 }
 0x20a   : > { %v4946_v48 = vadd.f32 %v4945_v6, %v4944_v10  ;;  %v8357_v62 = vpop.f32.mrb[20].mxu1  ;;  %v6176_v17 = vadd.f32 %v6175_v20, %v6124_v19  ;;  %v4777_v27 = vpop.f32.mrb[11].mxu0  ;;  %v4911_v24 = vmax.f32 %v6172_v37, 0.0  ;;  %v6193_v10 = vadd.f32 %v8336_v54, %v8331_v58 }
 0x20b   : > { %v8360_v3 = vpop.f32.mrb[21].mxu1  ;;  %v4909_v14 = vmax.f32 %v6174_v34, 0.0  ;;  %v6178_v39 = vadd.f32 %v6177_v63, %v4777_v27 }
 0x20c   : > { %v8362_v31 = vpop.f32.mrb[22].mxu1  ;;  %v4948_v13 = vadd.f32 %v4947_v12, %v4946_v48  ;;  %v4912_v5 = vmax.f32 %v6176_v17, 0.0  ;;  %v4953_v51 = vsel %vm4933_vm9, %v4911_v24, 0.0  ;;  %v6195_v24 = vadd.f32 %v8357_v62, %v8336_v54 }
 0x20d   : > { %v4949_v26 = vsel %vm4933_vm9, %v4909_v14, 0.0  ;;  %v8365_v35 = vpop.f32.mrb[23].mxu1  ;;  %v4910_v44 = vmax.f32 %v6178_v39, 0.0 }
 0x20e   : > { %v4950_v32 = vadd.f32 %v4949_v26, %v4948_v13  ;;  %v4955_v18 = vsel %vm4933_vm9, %v4912_v5, 0.0  ;;  %v6199_v5 = vadd.f32 %v8362_v31, %v8336_v54 }
 0x20f   : > { %v4951_v50 = vsel %vm4933_vm9, %v4910_v44, 0.0  ;;  %v6127_v60 = vpop.f32.mrb[12].mxu0  ;;  %v6197_v44 = vadd.f32 %v8336_v54, %v8360_v3 }
 0x210   : > { %v4952_v30 = vadd.f32 %v4951_v50, %v4950_v32  ;;  %v6180_v55 = vadd.f32 %v6179_v29, %v6127_v60  ;;  %v4790_v0 = vpop.f32.mrb[13].mxu0 }
 0x211   : > { %v6182_v9 = vadd.f32 %v6181_v52, %v4790_v0  ;;  %v6128_v11 = vpop.f32.mrb[14].mxu0 }
 0x212   : > { %v4954_v38 = vadd.f32 %v4953_v51, %v4952_v30  ;;  %v8377_v8 = vpop.f32.mrb[24].mxu1  ;;  %v6184_v7 = vadd.f32 %v6183_v1, %v6128_v11  ;;  %v4793_v43 = vpop.f32.mrb[15].mxu0  ;;  %v4915_v45 = vmax.f32 %v6180_v55, 0.0  ;;  %v6201_v30 = vadd.f32 %v8336_v54, %v8365_v35 }
 0x213   : > { %v8380_v28 = vpop.f32.mrb[25].mxu1  ;;  %v4913_v16 = vmax.f32 %v6182_v9, 0.0  ;;  %v6186_v33 = vadd.f32 %v6185_v59, %v4793_v43 }
 0x214   : > { %v8382_v53 = vpop.f32.mrb[26].mxu1  ;;  %v4956_v2 = vadd.f32 %v4955_v18, %v4954_v38  ;;  %v4916_v46 = vmax.f32 %v6184_v7, 0.0  ;;  %v4961_v37 = vsel %vm4933_vm9, %v4915_v45, 0.0 }
 0x215   : > { %v4957_v40 = vsel %vm4933_vm9, %v4913_v16, 0.0  ;;  %v8385_v61 = vpop.f32.mrb[27].mxu1  ;;  %v4914_v15 = vmax.f32 %v6186_v33, 0.0  ;;  %v6203_v16 = vadd.f32 %v8377_v8, %v8336_v54  ;;  %v6205_v33 = vadd.f32 %v8336_v54, %v8380_v28 }
 0x216   : > { %v4958_v22 = vadd.f32 %v4957_v40, %v4956_v2  ;;  %v4963_v19 = vsel %vm4933_vm9, %v4916_v46, 0.0  ;;  %v6209_v46 = vadd.f32 %v8336_v54, %v8385_v61 }
 0x217   : > { %v4959_v41 = vsel %vm4933_vm9, %v4914_v15, 0.0  ;;  %v6131_v23 = vpop.f32.mrb[16].mxu0  ;;  %v6207_v15 = vadd.f32 %v8382_v53, %v8336_v54 }
 0x218   : > { %v4960_v36 = vadd.f32 %v4959_v41, %v4958_v22  ;;  %v6188_v42 = vadd.f32 %v6187_v25, %v6131_v23  ;;  %v4806_v20 = vpop.f32.mrb[17].mxu0 }
 0x219   : > { %v6190_v57 = vadd.f32 %v6189_v4, %v4806_v20  ;;  %v6132_v21 = vpop.f32.mrb[18].mxu0 }
 0x21a   : > { %v4962_v63 = vadd.f32 %v4961_v37, %v4960_v36  ;;  %v6007_v6 = vpop.f32.mrb[28].mxu1  ;;  %v6192_v47 = vadd.f32 %v6191_v49, %v6132_v21  ;;  %v4809_v34 = vpop.f32.mrb[19].mxu0  ;;  %v4919_v14 = vmax.f32 %v6188_v42, 0.0 }
 0x21b   : > { %v2829_v48 = vpop.f32.mrb[29].mxu1  ;;  %v4917_v17 = vmax.f32 %v6190_v57, 0.0  ;;  %v6194_v27 = vadd.f32 %v6193_v10, %v4809_v34 }
 0x21c   : > { %v6008_v56 = vpop.f32.mrb[30].mxu1  ;;  %v4964_v12 = vadd.f32 %v4963_v19, %v4962_v63  ;;  %v4920_v29 = vmax.f32 %v6192_v47, 0.0  ;;  %v4969_v55 = vsel %vm4933_vm9, %v4919_v14, 0.0  ;;  %v6211_v63 = vadd.f32 %v6007_v6, %v8336_v54 }
 0x21d   : > { %v4965_v39 = vsel %vm4933_vm9, %v4917_v17, 0.0  ;;  %v2832_v13 = vpop.f32.mrb[31].mxu1  ;;  %v4918_v58 = vmax.f32 %v6194_v27, 0.0  ;;  %v6213_v61 = vadd.f32 %v8336_v54, %v2829_v48  ;;  %v6215_v27 = vadd.f32 %v6008_v56, %v8336_v54 }
 0x21e   : > { %v4966_v26 = vadd.f32 %v4965_v39, %v4964_v12  ;;  %v4971_v9 = vsel %vm4933_vm9, %v4920_v29, 0.0 }
 0x21f   : > { %v4967_v32 = vsel %vm4933_vm9, %v4918_v58, 0.0  ;;  %v6135_v52 = vpop.f32.mrb[20].mxu0  ;;  %v6217_v58 = vadd.f32 %v8336_v54, %v2832_v13 }
 0x220   : > { %v4968_v50 = vadd.f32 %v4967_v32, %v4966_v26  ;;  %v6196_v60 = vadd.f32 %v6195_v24, %v6135_v52  ;;  %v4822_v1 = vpop.f32.mrb[21].mxu0 }
 0x221   : > { %v6198_v62 = vadd.f32 %v6197_v44, %v4822_v1  ;;  %v6136_v0 = vpop.f32.mrb[22].mxu0 }
 0x222   : > { %v4970_v59 = vadd.f32 %v4969_v55, %v4968_v50  ;;  %v6200_v51 = vadd.f32 %v6199_v5, %v6136_v0  ;;  %v4825_v3 = vpop.f32.mrb[23].mxu0  ;;  %v4923_v43 = vmax.f32 %v6196_v60, 0.0 }
 0x223   : > { %v4921_v11 = vmax.f32 %v6198_v62, 0.0  ;;  %v6202_v38 = vadd.f32 %v6201_v30, %v4825_v3 }
 0x224   : > { %v4972_v7 = vadd.f32 %v4971_v9, %v4970_v59  ;;  %v4924_v2 = vmax.f32 %v6200_v51, 0.0  ;;  %v4977_v41 = vsel %vm4933_vm9, %v4923_v43, 0.0 }
 0x225   : > { %v4973_v31 = vsel %vm4933_vm9, %v4921_v11, 0.0  ;;  %v4922_v18 = vmax.f32 %v6202_v38, 0.0 }
 0x226   : > { %v4974_v35 = vadd.f32 %v4973_v31, %v4972_v7  ;;  %v4979_v42 = vsel %vm4933_vm9, %v4924_v2, 0.0 }
 0x227   : > { %v4975_v45 = vsel %vm4933_vm9, %v4922_v18, 0.0  ;;  %v6139_v40 = vpop.f32.mrb[24].mxu0 }
 0x228   : > { %v4976_v25 = vadd.f32 %v4975_v45, %v4974_v35  ;;  %v6204_v22 = vadd.f32 %v6203_v16, %v6139_v40  ;;  %v4838_v4 = vpop.f32.mrb[25].mxu0  ;;  %v5010_v16 = vld [vmem:[%s8489_s4] sm:$0x1] }
 0x229   : > { %v6206_v8 = vadd.f32 %v6205_v33, %v4838_v4  ;;  %v6140_v23 = vpop.f32.mrb[26].mxu0 }
 0x22a   : > { %v4978_v49 = vadd.f32 %v4977_v41, %v4976_v25  ;;  %v6208_v36 = vadd.f32 %v6207_v15, %v6140_v23  ;;  %v4841_v28 = vpop.f32.mrb[27].mxu0  ;;  %v4927_v57 = vmax.f32 %v6204_v22, 0.0 }
 0x22b   : > { %v4925_v20 = vmax.f32 %v6206_v8, 0.0  ;;  %v6210_v10 = vadd.f32 %v6209_v46, %v4841_v28 }
 0x22c   : > { %v4980_v37 = vadd.f32 %v4979_v42, %v4978_v49  ;;  %v4928_v34 = vmax.f32 %v6208_v36, 0.0  ;;  %v4985_v24 = vsel %vm4933_vm9, %v4927_v57, 0.0 }
 0x22d   : > { %v4981_v53 = vsel %vm4933_vm9, %v4925_v20, 0.0  ;;  %v4926_v21 = vmax.f32 %v6210_v10, 0.0 }
 0x22e   : > { %v4982_v47 = vadd.f32 %v4981_v53, %v4980_v37  ;;  %v4987_v48 = vsel %vm4933_vm9, %v4928_v34, 0.0 }
 0x22f   : > { %v4983_v19 = vsel %vm4933_vm9, %v4926_v21, 0.0  ;;  %v6143_v17 = vpop.f32.mrb[28].mxu0 }
 0x230   : > { %v4984_v12 = vadd.f32 %v4983_v19, %v4982_v47  ;;  %v6212_v14 = vadd.f32 %v6211_v63, %v6143_v17  ;;  %v4854_v39 = vpop.f32.mrb[29].mxu0 }
 0x231   : > { %v6214_v26 = vadd.f32 %v6213_v61, %v4854_v39  ;;  %v6144_v44 = vpop.f32.mrb[30].mxu0 }
 0x232   : > { %v4986_v29 = vadd.f32 %v4985_v24, %v4984_v12  ;;  %v6216_v6 = vadd.f32 %v6215_v27, %v6144_v44  ;;  %v4857_v32 = vpop.f32.mrb[31].mxu0  ;;  %v4931_v60 = vmax.f32 %v6212_v14, 0.0 }
 0x233   : > { %v4929_v52 = vmax.f32 %v6214_v26, 0.0  ;;  %v6218_v5 = vadd.f32 %v6217_v58, %v4857_v32 }
 0x234   : > { %v4988_v50 = vadd.f32 %v4987_v48, %v4986_v29  ;;  %v4932_v55 = vmax.f32 %v6216_v6, 0.0  ;;  %v4993_v62 = vsel %vm4933_vm9, %v4931_v60, 0.0 }
 0x235   : > { %v4989_v56 = vsel %vm4933_vm9, %v4929_v52, 0.0  ;;  %v4930_v1 = vmax.f32 %v6218_v5, 0.0 }
 0x236   : > { %v4990_v30 = vadd.f32 %v4989_v56, %v4988_v50  ;;  %v4995_v59 = vsel %vm4933_vm9, %v4932_v55, 0.0 }
 0x237   : > { %v4991_v54 = vsel %vm4933_vm9, %v4930_v1, 0.0 }
 0x238   : > { %v4992_v13 = vadd.f32 %v4991_v54, %v4990_v30 }
 0x23a   : > { %v4994_v0 = vadd.f32 %v4993_v62, %v4992_v13 }
 0x23c   : > { %v4996_v51 = vadd.f32 %v4995_v59, %v4994_v0 }
 0x23e   : > { %v4997_v3 = vrot.slane %v4996_v51, 4 }
 0x240   : > { %v4998_v9 = vadd.f32 %v4997_v3, %v4996_v51 }
 0x242   : > { %v4999_v11 = vrot.slane %v4998_v9, 2 }
 0x244   : > { %v5000_v38 = vadd.f32 %v4999_v11, %v4998_v9 }
 0x246   : > { %v5001_v7 = vrot.slane %v5000_v38, 1 }
 0x248   : > { %v5002_v43 = vadd.f32 %v5001_v7, %v5000_v38 }
 0x24a   : > { %v5004_v31 = vmul.f32 0.00390625, %v5002_v43 }
 0x24c   : > { %v5005_v18 = vpack.c.bf16 %v5004_v31, %v5004_v31 }
 0x24e   : > { %6150 = vmatmul.mubr.msk.bf16.vlgmr.msra.gmra.mrb[32].mxu1 %vm4933_vm9, %v5005_v18 }
 0x321   : > { %v5060_v35 = vpop.f32.mrb[32].mxu1 }
 0x322   : > { %v5061_v33 = vadd.f32 %v5060_v35, %v5010_v16  ;;  %v6151_v2 = vpop.f32.mrb[33].mxu1 }
 0x323   : > { %v5063_v45 = vpop.f32.mrb[34].mxu1 }
 0x324   : > { %5066 = vst [vmem:[%s216_s8] sm:$0x1] %v5061_v33  ;;  %v6152_v40 = vpop.f32.mrb[35].mxu1 }
 0x325   : > { %6573 = shalt.err (!%p6570_p3)
}
 0x326   : > { %s6574_s17 = scalar_lea.hbm %s8443_s12, 16  ;;  %s6578_s26 = scalar_lea.hbm %s8490_s5, 32 }
 0x327   : > { %p6575_p4 = scmp.ne.s32.totalorder %s8443_s12, %s6574_s17  ;;  %p6579_p9 = scmp.lt.u32.totalorder %s8443_s12, %s8490_s5 }
 0x328   : > { %p6580_p10 = scmp.lt.u32.totalorder %s6578_s26, %s6574_s17  ;;  %p6582_p12 = scmp.lt.u32.totalorder %s6574_s17, %s8443_s12 }
 0x329   : > { %p6576_p7 = pnand %p6575_p4, %p6695_p5 }
 0x32a   : > { %p6581_p11 = por %p6580_p10, %p6579_p9 }
 0x32b   : > { %p6577_p8 = pneg %p6576_p7 }
 0x32c   : > { %p6583_p13 = por %p6582_p12, %p6581_p11 }
 0x32e   : > { %p6584_p0 = pnand %p6583_p13, %p6577_p8 }
 0x330   : > { %6587 = shalt.err (!%p6584_p0)
}
 0x331   : > { %6454 = dma.vmem_to_hbm [thread:$0]  (%p6695_p5), %s8445_s9, 16, %s8443_s12, %s5068_s13  }
 0x332 PF: > { %p6460_p1 = scmp.ge.s32.totalorder %s6622_s21, 2  ;;  %s5092_s7 = sand.u32 1, %s6610_s18  }
 0x333   : > { %s5093_s8 = scalar_lea.sflag [#allocation3], %s5092_s7 }
 0x334   : > { %p6457_p2 = pnand %p6460_p1, %p6699_p6 }
 0x336   : > { %6605 = dma.done.wait (!%p6457_p2), %s5093_s8, 16  }
 0x337   : > { %6607 = vsyncadd (!%p6457_p2), %s5093_s8, 4294967280  ;;  %p15_p3 = scmp.ge.s32.totalorder %s6682_s24, 4   ;;  %s8507_s18 = smov %s6614_s19 }
 0x338   : > { %s8508_s19 = smov %s6618_s20  ;;  %s8509_s20 = smov %s6693_s27 }
 0x339   : > { %s8510_s21 = smov %s6682_s24  ;;  %17 = sbr.rel (!%p15_p3) target bundleno = 3 (0x3), region = 85 }
 0x340   :  { %5097 = vsyncpa [#allocation3], 1 }
 0x341   :  { %5099 = vsyncpa [#allocation3 + $0x1], 1 }

</bundles_post_ra>
